<compile_context>
chip_gen: v7x
topology: tpu7x:2x2x1
jax: 0.10.0
libtpu: 0.0.40
codegen_flags: <defaults>
</compile_context>

<pallas_src>
import functools

import jax
import jax.numpy as jnp
from jax.experimental import pallas as pl
from jax.experimental.pallas import tpu as pltpu


def _round_up(x, m):
    return (x + m - 1) // m * m


def _cdiv(a, b):
    return (a + b - 1) // b


def _pick_tile(n, tile_n):
    """Pick a lane tile (multiple of 128, <= tile_n).

    Minimizes tail padding, tie-breaking toward an even grid-step count (keeps
    both v7x TensorCores busy on the last step) and then toward larger tiles
    (per-grid-step overhead is ~0.35us).
    """
    n128 = _round_up(n, 128)
    if n128 <= tile_n:
        return n128                      # single tile, minimal padding
    best_key, best_t = None, tile_n
    for t in range(tile_n, 127, -128):
        steps = _cdiv(n, t)
        pad = steps * t - n
        key = (pad, steps % 2, -t)
        if best_key is None or key < best_key:
            best_key, best_t = key, t
    return best_t


def _tensorbase_kernel(pts_ref, lxt_ref, lyt_ref, lzt_ref, basist_ref, out_ref):
    g = lxt_ref.shape[1]
    tn = pts_ref.shape[1]
    scale = 0.5 * (g - 1)                                # align_corners=True

    # Shared coordinate prep on the full (3, tn) block: one fma+clamp pass
    # instead of three (1, tn) passes (same vreg footprint, 1/3 the VALU work).
    c_all = jnp.clip(pts_ref[...] * scale + scale, 0.0, float(g - 1))

    # One grid-index iota per tile, shared by all three axes (JAX does not CSE
    # broadcast_in_dim, so build it exactly once).
    gg = jax.lax.broadcasted_iota(jnp.int32, (g, tn), 0).astype(jnp.float32)

    def interp(c_row, linet):
        # Tent-function linear-interp weights: w[g] = max(0, 1 - |c - g|).
        # Mathematically identical to the clamped lerp (including the
        # i0 == i1 == G-1 clamp edge, where the single weight is exactly 1)
        # with roughly half the VALU slot-ops of the compare/select one-hot.
        w = jnp.maximum(0.0, 1.0 - jnp.abs(c_row - gg))          # (G, tn)
        # Gather expressed as an MXU-friendly matmul: (R, G) @ (G, tn).
        return jnp.dot(linet, w, preferred_element_type=jnp.float32)

    fx = interp(c_all[0:1, :], lxt_ref[...])                     # (R, tn)
    fy = interp(c_all[1:2, :], lyt_ref[...])
    fz = interp(c_all[2:3, :], lzt_ref[...])

    rank_feat = fx * fy * fz                                     # CP product

    # (F, R) @ (R, tn) -> (F, tn); lane-dense, unmasked store.
    out_ref[...] = jnp.dot(basist_ref[...], rank_feat,
                           preferred_element_type=jnp.float32
                           ).astype(out_ref.dtype)


@functools.partial(
    jax.jit,
    static_argnames=("tile_n", "out_dtype", "pts_transposed", "out_transposed"))
def tensorbase_forward(ray_pts, line_x, line_y, line_z, basis, *,
                       tile_n=2048, out_dtype=jnp.float32,
                       pts_transposed=False, out_transposed=False):
    """CP-decomposition feature lookup.

    ray_pts: (N, 3) f32 in [-1, 1]   (or (3, N) if pts_transposed=True, which
             skips the wrapper-side XLA transpose entirely).
    line_{x,y,z}: (G, R);  basis: (R, F).
    Returns (N, F) features, or the kernel-native lane-dense (F, N) if
    out_transposed=True (recommended for consumers that can take it -- the
    (N, F) transpose costs more HBM traffic than the kernel itself).
    out_dtype=bfloat16 is recommended on v5e (halves the dominant writeback
    stream; all intermediate math stays f32).
    """
    assert tile_n % 128 == 0
    if pts_transposed:
        assert ray_pts.shape[0] == 3
        n = ray_pts.shape[1]
        pts_t = ray_pts                                  # (3, N) lane-dense
    else:
        assert ray_pts.shape[1] == 3
        n = ray_pts.shape[0]
        pts_t = ray_pts.T                                # layout-only transpose
    g, r = line_x.shape
    f = basis.shape[1]

    # Lane-dense tiling: N is the lane axis everywhere.  Pick the tile to
    # minimize tail padding / balance grid steps; pad ragged N with in-range
    # coords (0.0) and slice the result afterwards.
    tile = _pick_tile(n, tile_n)
    n_pad = _round_up(n, tile)
    if n_pad != n:
        pts_t = jnp.pad(pts_t, ((0, 0), (0, n_pad - n)))

    # Tiny one-time transposes so the kernel matmuls are (R,G)@(G,tn) and
    # (F,R)@(R,tn), i.e. tn sits on the MXU's wide output side.
    line_xt, line_yt, line_zt = line_x.T, line_y.T, line_z.T   # (R, G)
    basis_t = basis.T                                           # (F, R)

    out_bytes = jnp.dtype(out_dtype).itemsize
    cost = pl.CostEstimate(
        flops=n_pad * (3 * 2 * r * g + 2 * f * r),
        transcendentals=0,
        bytes_accessed=(n_pad * 3 * 4                 # points
                        + n_pad * f * out_bytes       # output
                        + 3 * g * r * 4 + r * f * 4))  # resident tables

    out_t = pl.pallas_call(
        _tensorbase_kernel,
        out_shape=jax.ShapeDtypeStruct((f, n_pad), out_dtype),
        grid_spec=pltpu.PrefetchScalarGridSpec(
            num_scalar_prefetch=0,
            grid=(n_pad // tile,),
            in_specs=[
                pl.BlockSpec((3, tile), lambda i: (0, i)),
                pl.BlockSpec((r, g), lambda i: (0, 0)),
                pl.BlockSpec((r, g), lambda i: (0, 0)),
                pl.BlockSpec((r, g), lambda i: (0, 0)),
                pl.BlockSpec((f, r), lambda i: (0, 0)),
            ],
            out_specs=pl.BlockSpec((f, tile), lambda i: (0, i)),
        ),
        compiler_params=pltpu.CompilerParams(
            dimension_semantics=("parallel",)),
        cost_estimate=cost,
    )(pts_t, line_xt, line_yt, line_zt, basis_t)

    if out_transposed:
        return out_t[:, :n]                              # (F, N), no transpose
    # Slice the padded tail BEFORE the layout transpose (saves up to ~23% of
    # the transpose traffic at ragged N).
    return out_t[:, :n].T


def tensorbase_reference(ray_pts, line_x, line_y, line_z, basis):
    """Pure-JAX reference (same math, no Pallas)."""
    g = line_x.shape[0]

    def interp(coord, line):
        c = jnp.clip((coord + 1.0) * 0.5 * (g - 1), 0.0, g - 1)
        i0 = jnp.floor(c)
        i1 = jnp.minimum(i0 + 1, g - 1)
        frac = (c - i0)[:, None]
        v0 = line[i0.astype(jnp.int32)]
        v1 = line[i1.astype(jnp.int32)]
        return v0 * (1.0 - frac) + v1 * frac

    fx = interp(ray_pts[:, 0], line_x)
    fy = interp(ray_pts[:, 1], line_y)
    fz = interp(ray_pts[:, 2], line_z)
    return (fx * fy * fz) @ basis


if __name__ == "__main__":
    # Small shapes: gridSize=[16,16,16], rank R=32, feat_dim F=64, N=2500 pts.
    # N is deliberately ragged; the tile picker chooses 1280 -> 2 balanced
    # grid steps with only 60 padded points.
    key = jax.random.PRNGKey(0)
    k_pts, k_lx, k_ly, k_lz, k_b = jax.random.split(key, 5)

    G, R, F, N = 16, 32, 64, 2500

    ray_pts = jax.random.uniform(k_pts, (N, 3), jnp.float32, -1.0, 1.0)
    line_x = 0.1 * jax.random.normal(k_lx, (G, R), jnp.float32)
    line_y = 0.1 * jax.random.normal(k_ly, (G, R), jnp.float32)
    line_z = 0.1 * jax.random.normal(k_lz, (G, R), jnp.float32)
    basis = 0.1 * jax.random.normal(k_b, (R, F), jnp.float32)

    ref = tensorbase_reference(ray_pts, line_x, line_y, line_z, basis)

    # Default path: (N, 3) in -> (N, F) out, f32 parity with the reference.
    out = tensorbase_forward(ray_pts, line_x, line_y, line_z, basis,
                             out_dtype=jnp.float32)
    out = jax.block_until_ready(out)
    assert out.shape == (N, F)
    assert jnp.allclose(out, ref, atol=2e-5, rtol=1e-4), "f32 mismatch vs reference"

    # Lane-major fast path: (3, N) in, (F, N) out -- no wrapper transposes.
    out_fn = tensorbase_forward(ray_pts.T, line_x, line_y, line_z, basis,
                                out_dtype=jnp.float32,
                                pts_transposed=True, out_transposed=True)
    out_fn = jax.block_until_ready(out_fn)
    assert out_fn.shape == (F, N)
    assert jnp.allclose(out_fn.T, ref, atol=2e-5, rtol=1e-4), \
        "lane-major mismatch vs reference"

    # bf16 store: halves the dominant writeback stream (recommended on v5e).
    out_bf16 = tensorbase_forward(ray_pts, line_x, line_y, line_z, basis,
                                  out_dtype=jnp.bfloat16)
    out_bf16 = jax.block_until_ready(out_bf16)
    assert out_bf16.dtype == jnp.bfloat16
    assert jnp.allclose(out_bf16.astype(jnp.float32), ref,
                        atol=1e-3, rtol=2e-2), "bf16 mismatch vs reference"

    print("KERNEL_OK")
</pallas_src>

<mosaic_0001>
module attributes {stable_mosaic.version = 11 : i64} {
  func.func @_tensorbase_kernel(%arg0: i32, %arg1: memref<3x1280xf32, #tpu.memory_space<vmem>>, %arg2: memref<32x16xf32, #tpu.memory_space<vmem>>, %arg3: memref<32x16xf32, #tpu.memory_space<vmem>>, %arg4: memref<32x16xf32, #tpu.memory_space<vmem>>, %arg5: memref<64x32xf32, #tpu.memory_space<vmem>>, %arg6: memref<64x1280xf32, #tpu.memory_space<vmem>>) attributes {dimension_semantics = [#tpu.dimension_semantics<parallel>], iteration_bounds = array<i64: 2>, scalar_prefetch = 0 : i64, scratch_operands = 0 : i64, tpu.core_type = #tpu.core_type<tc>, window_params = [{transform_indices = @transform_0, window_bounds = array<i64: 3, 1280>}, {pipeline_mode = #tpu.pipeline_mode<synchronous>, transform_indices = @transform_1, window_bounds = array<i64: 32, 16>}, {pipeline_mode = #tpu.pipeline_mode<synchronous>, transform_indices = @transform_2, window_bounds = array<i64: 32, 16>}, {pipeline_mode = #tpu.pipeline_mode<synchronous>, transform_indices = @transform_3, window_bounds = array<i64: 32, 16>}, {pipeline_mode = #tpu.pipeline_mode<synchronous>, transform_indices = @transform_4, window_bounds = array<i64: 64, 32>}, {transform_indices = @transform_5, window_bounds = array<i64: 64, 1280>}]} {
    %c0 = arith.constant 0 : index
    %c0_0 = arith.constant 0 : index
    %0 = vector.load %arg1[%c0, %c0_0] : memref<3x1280xf32, #tpu.memory_space<vmem>>, vector<3x1280xf32>
    %cst = arith.constant 7.500000e+00 : f32
    %1 = vector.broadcast %cst : f32 to vector<3x1280xf32>
    %2 = arith.mulf %0, %1 : vector<3x1280xf32>
    %cst_1 = arith.constant 7.500000e+00 : f32
    %3 = vector.broadcast %cst_1 : f32 to vector<3x1280xf32>
    %4 = arith.addf %2, %3 : vector<3x1280xf32>
    %cst_2 = arith.constant 0.000000e+00 : f32
    %cst_3 = arith.constant 1.500000e+01 : f32
    %5 = vector.broadcast %cst_2 : f32 to vector<3x1280xf32>
    %6 = arith.maximumf %5, %4 : vector<3x1280xf32>
    %7 = vector.broadcast %cst_3 : f32 to vector<3x1280xf32>
    %8 = arith.minimumf %7, %6 : vector<3x1280xf32>
    %9 = tpu.iota {dimensions = array<i32: 0>} : vector<16x1280xi32>
    %10 = arith.sitofp %9 : vector<16x1280xi32> to vector<16x1280xf32>
    %11 = vector.extract_strided_slice %8 {offsets = [0, 0], sizes = [1, 1280], strides = [1, 1]} : vector<3x1280xf32> to vector<1x1280xf32>
    %c0_4 = arith.constant 0 : index
    %c0_5 = arith.constant 0 : index
    %12 = vector.load %arg2[%c0_4, %c0_5] : memref<32x16xf32, #tpu.memory_space<vmem>>, vector<32x16xf32>
    %13 = vector.broadcast %11 : vector<1x1280xf32> to vector<16x1280xf32>
    %14 = arith.subf %13, %10 : vector<16x1280xf32>
    %15 = math.absf %14 : vector<16x1280xf32>
    %cst_6 = arith.constant 1.000000e+00 : f32
    %16 = vector.broadcast %cst_6 : f32 to vector<16x1280xf32>
    %17 = arith.subf %16, %15 : vector<16x1280xf32>
    %cst_7 = arith.constant 0.000000e+00 : f32
    %18 = vector.broadcast %cst_7 : f32 to vector<16x1280xf32>
    %19 = arith.maximumf %18, %17 : vector<16x1280xf32>
    %cst_8 = arith.constant dense<0.000000e+00> : vector<32x1280xf32>
    %20 = tpu.matmul %12, %19, %cst_8 {dimension_numbers = #tpu.dot_dimension_numbers<[1], [0], [0], [1], [0, 0, 1, 1], [], []>} : vector<32x16xf32>, vector<16x1280xf32>, vector<32x1280xf32> -> vector<32x1280xf32>
    %21 = vector.extract_strided_slice %8 {offsets = [1, 0], sizes = [1, 1280], strides = [1, 1]} : vector<3x1280xf32> to vector<1x1280xf32>
    %c0_9 = arith.constant 0 : index
    %c0_10 = arith.constant 0 : index
    %22 = vector.load %arg3[%c0_9, %c0_10] : memref<32x16xf32, #tpu.memory_space<vmem>>, vector<32x16xf32>
    %23 = vector.broadcast %21 : vector<1x1280xf32> to vector<16x1280xf32>
    %24 = arith.subf %23, %10 : vector<16x1280xf32>
    %25 = math.absf %24 : vector<16x1280xf32>
    %cst_11 = arith.constant 1.000000e+00 : f32
    %26 = vector.broadcast %cst_11 : f32 to vector<16x1280xf32>
    %27 = arith.subf %26, %25 : vector<16x1280xf32>
    %cst_12 = arith.constant 0.000000e+00 : f32
    %28 = vector.broadcast %cst_12 : f32 to vector<16x1280xf32>
    %29 = arith.maximumf %28, %27 : vector<16x1280xf32>
    %cst_13 = arith.constant dense<0.000000e+00> : vector<32x1280xf32>
    %30 = tpu.matmul %22, %29, %cst_13 {dimension_numbers = #tpu.dot_dimension_numbers<[1], [0], [0], [1], [0, 0, 1, 1], [], []>} : vector<32x16xf32>, vector<16x1280xf32>, vector<32x1280xf32> -> vector<32x1280xf32>
    %31 = vector.extract_strided_slice %8 {offsets = [2, 0], sizes = [1, 1280], strides = [1, 1]} : vector<3x1280xf32> to vector<1x1280xf32>
    %c0_14 = arith.constant 0 : index
    %c0_15 = arith.constant 0 : index
    %32 = vector.load %arg4[%c0_14, %c0_15] : memref<32x16xf32, #tpu.memory_space<vmem>>, vector<32x16xf32>
    %33 = vector.broadcast %31 : vector<1x1280xf32> to vector<16x1280xf32>
    %34 = arith.subf %33, %10 : vector<16x1280xf32>
    %35 = math.absf %34 : vector<16x1280xf32>
    %cst_16 = arith.constant 1.000000e+00 : f32
    %36 = vector.broadcast %cst_16 : f32 to vector<16x1280xf32>
    %37 = arith.subf %36, %35 : vector<16x1280xf32>
    %cst_17 = arith.constant 0.000000e+00 : f32
    %38 = vector.broadcast %cst_17 : f32 to vector<16x1280xf32>
    %39 = arith.maximumf %38, %37 : vector<16x1280xf32>
    %cst_18 = arith.constant dense<0.000000e+00> : vector<32x1280xf32>
    %40 = tpu.matmul %32, %39, %cst_18 {dimension_numbers = #tpu.dot_dimension_numbers<[1], [0], [0], [1], [0, 0, 1, 1], [], []>} : vector<32x16xf32>, vector<16x1280xf32>, vector<32x1280xf32> -> vector<32x1280xf32>
    %41 = arith.mulf %20, %30 : vector<32x1280xf32>
    %42 = arith.mulf %41, %40 : vector<32x1280xf32>
    %c0_19 = arith.constant 0 : index
    %c0_20 = arith.constant 0 : index
    %43 = vector.load %arg5[%c0_19, %c0_20] : memref<64x32xf32, #tpu.memory_space<vmem>>, vector<64x32xf32>
    %cst_21 = arith.constant dense<0.000000e+00> : vector<64x1280xf32>
    %44 = tpu.matmul %43, %42, %cst_21 {dimension_numbers = #tpu.dot_dimension_numbers<[1], [0], [0], [1], [0, 0, 1, 1], [], []>} : vector<64x32xf32>, vector<32x1280xf32>, vector<64x1280xf32> -> vector<64x1280xf32>
    %c0_22 = arith.constant 0 : index
    %c0_23 = arith.constant 0 : index
    %45 = vector.load %arg6[%c0_22, %c0_23] : memref<64x1280xf32, #tpu.memory_space<vmem>>, vector<64x1280xf32>
    tpu.vector_store %arg6[%c0_22, %c0_23], %44 {strides = array<i32>} : memref<64x1280xf32, #tpu.memory_space<vmem>>, vector<64x1280xf32>,
    return
  }
  func.func @transform_0(%arg0: i32) -> (i32, i32) {
    %c0_i32 = arith.constant 0 : i32
    %c0_i32_0 = arith.constant 0 : i32
    return %c0_i32, %arg0 : i32, i32
  }
  func.func @transform_1(%arg0: i32) -> (i32, i32) {
    %c0_i32 = arith.constant 0 : i32
    %c0_i32_0 = arith.constant 0 : i32
    %c0_i32_1 = arith.constant 0 : i32
    return %c0_i32, %c0_i32_0 : i32, i32
  }
  func.func @transform_2(%arg0: i32) -> (i32, i32) {
    %c0_i32 = arith.constant 0 : i32
    %c0_i32_0 = arith.constant 0 : i32
    %c0_i32_1 = arith.constant 0 : i32
    return %c0_i32, %c0_i32_0 : i32, i32
  }
  func.func @transform_3(%arg0: i32) -> (i32, i32) {
    %c0_i32 = arith.constant 0 : i32
    %c0_i32_0 = arith.constant 0 : i32
    %c0_i32_1 = arith.constant 0 : i32
    return %c0_i32, %c0_i32_0 : i32, i32
  }
  func.func @transform_4(%arg0: i32) -> (i32, i32) {
    %c0_i32 = arith.constant 0 : i32
    %c0_i32_0 = arith.constant 0 : i32
    %c0_i32_1 = arith.constant 0 : i32
    return %c0_i32, %c0_i32_0 : i32, i32
  }
  func.func @transform_5(%arg0: i32) -> (i32, i32) {
    %c0_i32 = arith.constant 0 : i32
    %c0_i32_0 = arith.constant 0 : i32
    return %c0_i32, %arg0 : i32, i32
  }
}

</mosaic_0001>

<bundles_post_ra>
// kernel: tensorbase_forward.1
= control target key start
LH: loop header
LB: loop body
LE: loop exit
PB: predicated region body
PF: predicated region fallthrough
CT: control target
= control target key end

     0   :  { %s3437_s18 = smov 0   ;;  %s3439_s19 = smov 0   ;;  %s4427_s0 = inlined_call_operand.vmem [shape: f32[3,2560], index: 0, kind: input, shape index: {}]   ;;  %s4428_s1 = inlined_call_operand.vmem [shape: f32[32,16], index: 1, kind: input, shape index: {}]   ;;  %s4429_s2 = inlined_call_operand.vmem [shape: f32[32,16], index: 2, kind: input, shape index: {}]   ;;  %s4430_s3 = inlined_call_operand.vmem [shape: f32[32,16], index: 3, kind: input, shape index: {}]   ;;  %s4431_s4 = inlined_call_operand.vmem [shape: f32[64,32], index: 4, kind: input, shape index: {}]   ;;  %s4432_s5 = inlined_call_operand.vmem [shape: f32[64,2560], index: 5, kind: output, shape index: {}]  }
   0x1   :  { %s3441_s20 = smov 0  }
   0x2 LB: > { %s3450_s21 = sadd.s32 4294967295, %s3404_s20   ;;  %s3452_s22 = sadd.s32 1, %s3404_s20   ;;  %s3404_s20 = sphi %s3441_s20, %s4436_s20   ;;  %s3400_s19 = sphi %s3439_s19, %s4435_s19   ;;  %s3396_s18 = sphi %s3437_s18, %s4434_s18  }
   0x3   : > { %s129_s23 = ssub.s32 %s3404_s20, %s3452_s22  ;;  %s132_s24 = sadd.s32 1, %s3400_s19 }
   0x4   : > { %p130_p0 = scmp.eq.s32.totalorder %s129_s23, 0  ;;  %p142_p1 = scmp.ne.s32.totalorder %s3400_s19, %s3396_s18 }
   0x5   : > { %p143_p2 = scmp.eq.s32.totalorder %s3450_s21, 1  ;;  %p3148_p3 = scmp.ge.s32.totalorder %s3404_s20, 1 }
   0x6   : > { %s3460_s25 = scalar_select %p130_p0, %s3400_s19, %s132_s24  }
   0x7   : > { %p3462_p4 = por %p143_p2, %p142_p1  ;;  %p188_p5 = scmp.lt.s32.totalorder %s3404_s20, 3 }
   0x9   : > { %p189_p6 = pnand %p3148_p3, %p188_p5 }
   0xa   : > { %s215_s27 = smul.u32 (!%p189_p6), 10, %s3450_s21  ;;  %v3406_v0 = vmov (!%p189_p6), 0.0   ;;  %v247_v1 = vlaneseq (!%p189_p6)  ;;  %vm431_vm0 = vcmask (!%p189_p6), 130048   ;;  %vm2239_vm1 = vcmask (!%p189_p6), 261120   ;;  %s212_s9 = sand.u32 (!%p189_p6), 1, %s3396_s18  }
   0xb   : > { %192 = sbr.rel (%p189_p6) target bundleno = 683 (0x2ab), region = 40  ;;  %508 = vmatprep.mubr.f32.mxu0 (!%p189_p6), %v3406_v0  ;;  %609 = vmatprep.mubr.f32.mxu1 (!%p189_p6), %v3406_v0 }
   0xc   : > { %p216_p7 = scmp.lt.s32.totalorder (!%p189_p6), %s215_s27, 19  ;;  %v3472_v2 = vshrl.u32 (!%p189_p6), %v247_v1, 7  ;;  %s3356_s10 = smul.u32 (!%p189_p6), 640, %s212_s9 }
   0xe   : > { %v249_v16 = vadd.s32 (!%p189_p6), 8, %v3472_v2  ;;  %v3476_v17 = vsub.s32 (!%p189_p6), 0, %v3472_v2  ;;  %v3479_v18 = vsub.s32 (!%p189_p6), 4, %v3472_v2  ;;  %v3484_v25 = vsub.s32 (!%p189_p6), 5, %v3472_v2  ;;  %s4167_s11 = scalar_lea.vmem (!%p189_p6), [#allocation2], %s3356_s10 }
   0xf   : > { %v3489_v27 = vcvt.s32.f32 (!%p189_p6), %v3472_v2  ;;  %v3498_v31 = vsub.s32 (!%p189_p6), 1, %v3472_v2 }
  0x10   : > { %v3495_v30 = vcvt.s32.f32 (!%p189_p6), %v249_v16 }
  0x12   : > { %s4438_s27 = smov (!%p216_p7, %s215_s27), 19  ;;  %s3253_s18 = smul.u32 (%p3462_p4), 80, %s3450_s21 }
  0x13   : > { %s3149_s28 = sshll.u32 %s4438_s27, 2 }
  0x14   : > { %s219_s6 = scalar_lea.vmem %s4427_s0, %s3149_s28  ;;  %s4261_s13 = scalar_lea.vmem (%p3462_p4), %s4432_s5, %s3253_s18 }
  0x15   : > { %v222_v3 = vld [vmem:[%s219_s6] sm:$0x77]  ;;  %v223_v4 = vld [vmem:[%s219_s6 + $0x8] sm:$0x77]  ;;  %v225_v5 = vld [vmem:[%s219_s6 + $0x18] sm:$0x77] }
  0x16   : > { %v227_v6 = vmul.f32 7.5, %v222_v3  ;;  %v228_v7 = vmul.f32 7.5, %v223_v4  ;;  %v230_v8 = vmul.f32 7.5, %v225_v5  ;;  %v224_v9 = vld [vmem:[%s219_s6 + $0x10] sm:$0x77] }
  0x17   : > { %v229_v10 = vmul.f32 7.5, %v224_v9  ;;  %v226_v11 = vld [vmem:[%s219_s6 + $0x20] sm:$0x77] }
  0x18   : > { %v232_v12 = vadd.f32 7.5, %v227_v6  ;;  %v233_v13 = vadd.f32 7.5, %v228_v7  ;;  %v235_v14 = vadd.f32 7.5, %v230_v8  ;;  %v231_v15 = vmul.f32 7.5, %v226_v11 }
  0x19   : > { %v234_v19 = vadd.f32 7.5, %v229_v10 }
  0x1a   : > { %v237_v20 = vmax.f32 %v232_v12, 0.0  ;;  %v238_v21 = vmax.f32 %v233_v13, 0.0  ;;  %v240_v22 = vmax.f32 %v235_v14, 0.0  ;;  %v3481_v23 = vadd.f32 7.5, %v231_v15 }
  0x1b   : > { %v239_v24 = vmax.f32 %v234_v19, 0.0 }
  0x1c   : > { %v3486_v26 = vmin.f32 %v237_v20, 15.0  ;;  %v3491_v28 = vmin.f32 %v238_v21, 15.0  ;;  %v3493_v29 = vmin.f32 %v240_v22, 15.0  ;;  %v241_v33 = vmax.f32 %v3481_v23, 0.0 }
  0x1d   : > { %v3500_v32 = vmin.f32 %v239_v24, 15.0 }
  0x1e   : > { %v268_v34 = vrot.slane %v3486_v26, %v3479_v18  ;;  %v276_v35 = vrot.slane %v3491_v28, %v3479_v18  ;;  %v264_v36 = vrot.slane %v3486_v26, %v3476_v17  ;;  %v272_v37 = vrot.slane %v3491_v28, %v3476_v17 }
  0x1f   : > { %v292_v38 = vrot.slane %v3493_v29, %v3479_v18  ;;  %v288_v39 = vrot.slane %v3493_v29, %v3476_v17  ;;  %v284_v40 = vrot.slane %v3500_v32, %v3479_v18  ;;  %v900_v41 = vrot.slane %v3486_v26, %v3484_v25 }
  0x20   : > { %v318_v42 = vrot.slane %v268_v34, %v3476_v17  ;;  %v326_v43 = vrot.slane %v276_v35, %v3476_v17  ;;  %v314_v44 = vrot.slane %v264_v36, %v3476_v17  ;;  %v322_v45 = vrot.slane %v272_v37, %v3476_v17 }
  0x21   : > { %v342_v46 = vrot.slane %v292_v38, %v3476_v17  ;;  %v338_v47 = vrot.slane %v288_v39, %v3476_v17  ;;  %v3526_v48 = vrot.slane %v284_v40, %v3476_v17  ;;  %v3529_v49 = vrot.slane %v900_v41, %v3498_v31 }
  0x22   : > { %v352_v50 = vsub.f32 %v318_v42, %v3489_v27  ;;  %v362_v51 = vsub.f32 %v318_v42, %v3495_v30  ;;  %v354_v52 = vsub.f32 %v326_v43, %v3489_v27  ;;  %v364_v53 = vsub.f32 %v326_v43, %v3495_v30 }
  0x23   : > { %v351_v54 = vsub.f32 %v314_v44, %v3489_v27  ;;  %v361_v55 = vsub.f32 %v314_v44, %v3495_v30  ;;  %v353_v56 = vsub.f32 %v322_v45, %v3489_v27  ;;  %v363_v57 = vsub.f32 %v322_v45, %v3495_v30  ;;  %v3548_v45 = vld [vmem:[%s4428_s1] sm:$0xff] }
  0x24   : > { %v372_v58 = vand.u32 2147483647, %v352_v50  ;;  %v382_v59 = vand.u32 2147483647, %v362_v51  ;;  %v374_v60 = vand.u32 2147483647, %v354_v52  ;;  %v358_v61 = vsub.f32 %v342_v46, %v3489_v27 }
  0x25   : > { %v384_v62 = vand.u32 2147483647, %v364_v53  ;;  %v371_v63 = vand.u32 2147483647, %v351_v54  ;;  %v381_v1 = vand.u32 2147483647, %v361_v55  ;;  %v368_v3 = vsub.f32 %v342_v46, %v3495_v30 }
  0x26   : > { %v392_v4 = vsub.f32 1.0, %v372_v58  ;;  %v402_v5 = vsub.f32 1.0, %v382_v59  ;;  %v394_v6 = vsub.f32 1.0, %v374_v60  ;;  %v373_v7 = vand.u32 2147483647, %v353_v56  ;;  %v3557_v55 = vld [vmem:[%s4428_s1 + $0x10] sm:$0xff] }
  0x27   : > { %v404_v8 = vsub.f32 1.0, %v384_v62  ;;  %v391_v9 = vsub.f32 1.0, %v371_v63  ;;  %v401_v10 = vsub.f32 1.0, %v381_v1  ;;  %v383_v11 = vand.u32 2147483647, %v363_v57  ;;  %v3569_v63 = vld [vmem:[%s4428_s1 + $0x8] sm:$0xff] }
  0x28   : > { %v412_v12 = vmax.f32 %v392_v4, 0.0  ;;  %v422_v13 = vmax.f32 %v402_v5, 0.0  ;;  %v414_v14 = vmax.f32 %v394_v6, 0.0  ;;  %v393_v15 = vsub.f32 1.0, %v373_v7 }
  0x29   : > { %v424_v16 = vmax.f32 %v404_v8, 0.0  ;;  %v411_v19 = vmax.f32 %v391_v9, 0.0  ;;  %v421_v20 = vmax.f32 %v401_v10, 0.0  ;;  %v403_v21 = vsub.f32 1.0, %v383_v11  ;;  %v3580_v9 = vld [vmem:[%s4428_s1 + $0x18] sm:$0xff] }
  0x2a   : > { %v3254_v22 = vpack.c.bf16 %v422_v13, %v412_v12  ;;  %v413_v24 = vmax.f32 %v393_v15, 0.0  ;;  %v378_v34 = vand.u32 2147483647, %v358_v61  ;;  %v388_v35 = vand.u32 2147483647, %v368_v3 }
  0x2b   : > { %v3258_v36 = vpack.c.bf16 %v424_v16, %v414_v14  ;;  %v3256_v37 = vpack.c.bf16 %v421_v20, %v411_v19  ;;  %v423_v38 = vmax.f32 %v403_v21, 0.0  ;;  %v357_v39 = vsub.f32 %v338_v47, %v3489_v27 }
  0x2c   : > { %3255 = vmatprep.subr.bf16.mxu0 %v3254_v22  ;;  %v398_v40 = vsub.f32 1.0, %v378_v34  ;;  %v408_v41 = vsub.f32 1.0, %v388_v35  ;;  %v367_v42 = vsub.f32 %v338_v47, %v3495_v30  ;;  %v356_v43 = vsub.f32 %v3526_v48, %v3489_v27 }
  0x2d   : > { %3354 = vmatprep.subr.bf16.mxu1 %v3258_v36  ;;  %3257 = vmatpush1.bf16.msra.mxu0 %v3256_v37  ;;  %v3260_v44 = vpack.c.bf16 %v423_v38, %v413_v24  ;;  %v377_v46 = vand.u32 2147483647, %v357_v39  ;;  %v366_v50 = vsub.f32 %v3526_v48, %v3495_v30  ;;  %v984_v51 = vsub.f32 %v3529_v49, %v3489_v27 }
  0x2e   : > { %3259 = vmatprep.subr.bf16.mxu0 %v3258_v36  ;;  %v418_v47 = vmax.f32 %v398_v40, 0.0  ;;  %v428_v52 = vmax.f32 %v408_v41, 0.0  ;;  %v387_v53 = vand.u32 2147483647, %v367_v42  ;;  %v376_v54 = vand.u32 2147483647, %v356_v43 }
  0x2f   : > { %3355 = vmatpush1.bf16.msra.mxu1 %v3260_v44  ;;  %v397_v56 = vsub.f32 1.0, %v377_v46  ;;  %v386_v57 = vand.u32 2147483647, %v366_v50  ;;  %v994_v58 = vsub.f32 %v3529_v49, %v3495_v30  ;;  %v1004_v48 = vand.u32 2147483647, %v984_v51 }
  0x30   : > { %3150 = vmatmul.mubr.msk.f32.vlgmr.msra.gmra.mrb[0].mxu0 %vm431_vm0, %v3548_v45  ;;  %v3266_v59 = vpack.c.bf16 %v428_v52, %v418_v47  ;;  %v407_v60 = vsub.f32 1.0, %v387_v53  ;;  %v396_v61 = vsub.f32 1.0, %v376_v54  ;;  %v280_v62 = vrot.slane %v3500_v32, %v3476_v17 }
  0x31   : > { %514 = vmatprep.mubr.f32.mxu0 %v3406_v0  ;;  %3261 = vmatpush1.bf16.msra.mxu0 %v3260_v44  ;;  %v417_v1 = vmax.f32 %v397_v56, 0.0  ;;  %v406_v49 = vsub.f32 1.0, %v386_v57  ;;  %v1014_v3 = vand.u32 2147483647, %v994_v58  ;;  %v1024_v4 = vsub.f32 1.0, %v1004_v48 }
  0x32   : > { %3156 = vmatmul.mubr.msk.f32.vlgmr.msra.gmra.mrb[0].mxu1 %vm431_vm0, %v3557_v55  ;;  %3267 = vmatprep.subr.bf16.mxu1 %v3266_v59  ;;  %v427_v5 = vmax.f32 %v407_v60, 0.0  ;;  %v416_v6 = vmax.f32 %v396_v61, 0.0  ;;  %v330_v7 = vrot.slane %v280_v62, %v3476_v17  ;;  %v896_v8 = vrot.slane %v3486_v26, %v3498_v31 }
  0x33   : > { %615 = vmatprep.mubr.f32.mxu1 %v3406_v0  ;;  %v426_v10 = vmax.f32 %v406_v49, 0.0  ;;  %v1034_v11 = vsub.f32 1.0, %v1014_v3  ;;  %v1044_v12 = vmax.f32 %v1024_v4, 0.0  ;;  %v3584_v13 = vmin.f32 %v241_v33, 15.0 }
  0x34   : > { %3151 = vmatmul.mubr.msk.f32.gmra.mrb[2].mxu0 %vm431_vm0, %v3569_v63  ;;  %v3268_v14 = vpack.c.bf16 %v427_v5, %v417_v1  ;;  %v355_v15 = vsub.f32 %v330_v7, %v3489_v27  ;;  %v365_v16 = vsub.f32 %v330_v7, %v3495_v30  ;;  %v946_v19 = vrot.slane %v896_v8, %v3498_v31 }
  0x35   : > { %520 = vmatprep.mubr.f32.mxu0 %v3406_v0  ;;  %v3262_v20 = vpack.c.bf16 %v426_v10, %v416_v6  ;;  %v1054_v21 = vmax.f32 %v1034_v11, 0.0  ;;  %v300_v22 = vrot.slane %v3584_v13, %v3479_v18  ;;  %v296_v23 = vrot.slane %v3584_v13, %v3476_v17 }
  0x36   : > { %3157 = vmatmul.mubr.msk.f32.gmra.mrb[2].mxu1 %vm431_vm0, %v3580_v9  ;;  %v375_v33 = vand.u32 2147483647, %v355_v15  ;;  %v385_v24 = vand.u32 2147483647, %v365_v16  ;;  %v983_v34 = vsub.f32 %v946_v19, %v3489_v27  ;;  %v993_v35 = vsub.f32 %v946_v19, %v3495_v30 }
  0x37   : > { %3269 = vmatpush1.bf16.msra.mxu1 %v3268_v14  ;;  %775 = vmatprep.mubr.f32.mxu1 %v3406_v0  ;;  %v3274_v36 = vpack.c.bf16 %v1054_v21, %v1044_v12  ;;  %v350_v37 = vrot.slane %v300_v22, %v3476_v17  ;;  %v346_v18 = vrot.slane %v296_v23, %v3476_v17 }
  0x38   : > { %3152 = vmatmul.mubr.msk.f32.gmra.mrb[4].mxu0 %vm431_vm0, %v3557_v55  ;;  %3263 = vmatprep.subr.bf16.mxu0 %v3262_v20  ;;  %v395_v38 = vsub.f32 1.0, %v375_v33  ;;  %v405_v39 = vsub.f32 1.0, %v385_v24  ;;  %v1003_v40 = vand.u32 2147483647, %v983_v34  ;;  %v1013_v41 = vand.u32 2147483647, %v993_v35 }
  0x39   : > { %526 = vmatprep.mubr.f32.mxu0 %v3406_v0  ;;  %3275 = vmatprep.subr.bf16.mxu1 %v3274_v36  ;;  %v360_v42 = vsub.f32 %v350_v37, %v3489_v27  ;;  %v370_v43 = vsub.f32 %v350_v37, %v3495_v30  ;;  %v359_v44 = vsub.f32 %v346_v18, %v3489_v27  ;;  %v3643_v35 = vsub.s32 6, %v3472_v2 }
  0x3a   : > { %3162 = vmatmul.mubr.msk.f32.vlgmr.msra.gmra.mrb[4].mxu1 %vm431_vm0, %v3548_v45  ;;  %v415_v17 = vmax.f32 %v395_v38, 0.0  ;;  %v425_v46 = vmax.f32 %v405_v39, 0.0  ;;  %v1023_v50 = vsub.f32 1.0, %v1003_v40  ;;  %v1033_v51 = vsub.f32 1.0, %v1013_v41 }
  0x3b   : > { %781 = vmatprep.mubr.f32.mxu1 %v3406_v0  ;;  %v380_v47 = vand.u32 2147483647, %v360_v42  ;;  %v390_v52 = vand.u32 2147483647, %v370_v43  ;;  %v369_v53 = vsub.f32 %v346_v18, %v3495_v30  ;;  %v379_v54 = vand.u32 2147483647, %v359_v44 }
  0x3c   : > { %3153 = vmatmul.mubr.msk.f32.gmra.mrb[6].mxu0 %vm431_vm0, %v3580_v9  ;;  %v3264_v56 = vpack.c.bf16 %v425_v46, %v415_v17  ;;  %v1043_v57 = vmax.f32 %v1023_v50, 0.0  ;;  %v1053_v58 = vmax.f32 %v1033_v51, 0.0  ;;  %v916_v48 = vrot.slane %v3500_v32, %v3484_v25  ;;  %v3657_v50 = vld [vmem:[%s4429_s2] sm:$0xff] }
  0x3d   : > { %597 = vmatprep.mubr.f32.mxu0 %v3406_v0  ;;  %v400_v59 = vsub.f32 1.0, %v380_v47  ;;  %v410_v60 = vsub.f32 1.0, %v390_v52  ;;  %v389_v61 = vand.u32 2147483647, %v369_v53  ;;  %v399_v62 = vsub.f32 1.0, %v379_v54 }
  0x3e   : > { %3163 = vmatmul.mubr.msk.f32.gmra.mrb[6].mxu1 %vm431_vm0, %v3569_v63  ;;  %v3276_v1 = vpack.c.bf16 %v1053_v58, %v1043_v57  ;;  %v966_v49 = vrot.slane %v916_v48, %v3498_v31  ;;  %v912_v3 = vrot.slane %v3500_v32, %v3498_v31  ;;  %v908_v4 = vrot.slane %v3491_v28, %v3484_v25 }
  0x3f   : > { %787 = vmatprep.mubr.f32.mxu1 %v3406_v0  ;;  %v420_v5 = vmax.f32 %v400_v59, 0.0  ;;  %v430_v6 = vmax.f32 %v410_v60, 0.0  ;;  %v409_v7 = vsub.f32 1.0, %v389_v61  ;;  %v419_v8 = vmax.f32 %v399_v62, 0.0 }
  0x40   : > { %3154 = vmatmul.mubr.msk.f32.vlgmr.msra.gmra.mrb[8].mxu0 %vm431_vm0, %v3548_v45  ;;  %3277 = vmatpush1.bf16.msra.mxu1 %v3276_v1  ;;  %v988_v10 = vsub.f32 %v966_v49, %v3489_v27  ;;  %v998_v11 = vsub.f32 %v966_v49, %v3495_v30  ;;  %v962_v12 = vrot.slane %v912_v3, %v3498_v31  ;;  %v3670_v3 = vsub.s32 2, %v3472_v2 }
  0x41   : > { %603 = vmatprep.mubr.f32.mxu0 %v3406_v0  ;;  %3265 = vmatpush1.bf16.msra.mxu0 %v3264_v56  ;;  %v3270_v14 = vpack.c.bf16 %v430_v6, %v420_v5  ;;  %v429_v15 = vmax.f32 %v409_v7, 0.0  ;;  %v958_v16 = vrot.slane %v908_v4, %v3498_v31  ;;  %v904_v19 = vrot.slane %v3491_v28, %v3498_v31  ;;  %v3676_v4 = vld [vmem:[%s4429_s2 + $0x8] sm:$0xff] }
  0x42   : > { %3164 = vmatmul.mubr.msk.f32.gmra.mrb[8].mxu1 %vm431_vm0, %v3557_v55  ;;  %v1008_v20 = vand.u32 2147483647, %v988_v10  ;;  %v1018_v21 = vand.u32 2147483647, %v998_v11  ;;  %v987_v22 = vsub.f32 %v962_v12, %v3489_v27  ;;  %v997_v23 = vsub.f32 %v962_v12, %v3495_v30 }
  0x43   : > { %793 = vmatprep.mubr.f32.mxu1 %v3406_v0  ;;  %3271 = vmatprep.subr.bf16.mxu0 %v3270_v14  ;;  %v3272_v33 = vpack.c.bf16 %v429_v15, %v419_v8  ;;  %v986_v24 = vsub.f32 %v958_v16, %v3489_v27  ;;  %v996_v34 = vsub.f32 %v958_v16, %v3495_v30 }
  0x44   : > { %3155 = vmatmul.mubr.msk.f32.gmra.mrb[10].mxu0 %vm431_vm0, %v3569_v63  ;;  %v1028_v36 = vsub.f32 1.0, %v1008_v20  ;;  %v1038_v37 = vsub.f32 1.0, %v1018_v21  ;;  %v1007_v18 = vand.u32 2147483647, %v987_v22  ;;  %v1017_v38 = vand.u32 2147483647, %v997_v23 }
  0x45   : > { %686 = vmatprep.mubr.f32.mxu0 %v3406_v0  ;;  %v1006_v39 = vand.u32 2147483647, %v986_v24  ;;  %v1016_v40 = vand.u32 2147483647, %v996_v34  ;;  %v954_v41 = vrot.slane %v904_v19, %v3498_v31  ;;  %v932_v42 = vrot.slane %v3584_v13, %v3484_v25  ;;  %v3697_v20 = vld [vmem:[%s4429_s2 + $0x10] sm:$0xff] }
  0x46   : > { %3165 = vmatmul.mubr.msk.f32.gmra.mrb[10].mxu1 %vm431_vm0, %v3580_v9  ;;  %v1048_v43 = vmax.f32 %v1028_v36, 0.0  ;;  %v1058_v44 = vmax.f32 %v1038_v37, 0.0  ;;  %v1027_v17 = vsub.f32 1.0, %v1007_v18  ;;  %v1037_v46 = vsub.f32 1.0, %v1017_v38 }
  0x47   : > { %1139 = vmatprep.mubr.f32.mxu1 %v3406_v0  ;;  %v1026_v51 = vsub.f32 1.0, %v1006_v39  ;;  %v1036_v47 = vsub.f32 1.0, %v1016_v40  ;;  %v985_v52 = vsub.f32 %v954_v41, %v3489_v27  ;;  %v995_v53 = vsub.f32 %v954_v41, %v3495_v30 }
  0x48   : > { %3158 = vmatmul.mubr.msk.f32.vlgmr.msra.gmra.mrb[12].mxu0 %vm431_vm0, %v3548_v45  ;;  %v3282_v54 = vpack.c.bf16 %v1058_v44, %v1048_v43  ;;  %v1047_v56 = vmax.f32 %v1027_v17, 0.0  ;;  %v1057_v57 = vmax.f32 %v1037_v46, 0.0  ;;  %v982_v58 = vrot.slane %v932_v42, %v3498_v31  ;;  %v3715_v44 = vld [vmem:[%s4429_s2 + $0x18] sm:$0xff] }
  0x49   : > { %692 = vmatprep.mubr.f32.mxu0 %v3406_v0  ;;  %3273 = vmatpush1.bf16.msra.mxu0 %v3272_v33  ;;  %v1046_v48 = vmax.f32 %v1026_v51, 0.0  ;;  %v1056_v59 = vmax.f32 %v1036_v47, 0.0  ;;  %v1005_v60 = vand.u32 2147483647, %v985_v52  ;;  %v1015_v61 = vand.u32 2147483647, %v995_v53 }
  0x4a   : > { %3170 = vmatmul.mubr.msk.f32.vlgmr.msra.gmra.mrb[12].mxu1 %vm431_vm0, %v3657_v50  ;;  %3283 = vmatprep.subr.bf16.mxu1 %v3282_v54  ;;  %v3284_v62 = vpack.c.bf16 %v1057_v57, %v1047_v56  ;;  %v992_v1 = vsub.f32 %v982_v58, %v3489_v27  ;;  %v1002_v49 = vsub.f32 %v982_v58, %v3495_v30 }
  0x4b   : > { %1145 = vmatprep.mubr.f32.mxu1 %v3406_v0  ;;  %v3278_v5 = vpack.c.bf16 %v1056_v59, %v1046_v48  ;;  %v928_v6 = vrot.slane %v3584_v13, %v3498_v31  ;;  %v924_v2 = vrot.slane %v3493_v29, %v3484_v25  ;;  %v920_v10 = vrot.slane %v3493_v29, %v3498_v31 }
  0x4c   : > { %3159 = vmatmul.mubr.msk.f32.gmra.mrb[14].mxu0 %vm431_vm0, %v3569_v63  ;;  %3285 = vmatpush1.bf16.msra.mxu1 %v3284_v62  ;;  %v1012_v7 = vand.u32 2147483647, %v992_v1  ;;  %v1022_v8 = vand.u32 2147483647, %v1002_v49  ;;  %v1025_v11 = vsub.f32 1.0, %v1005_v60  ;;  %v1035_v12 = vsub.f32 1.0, %v1015_v61 }
  0x4d   : > { %698 = vmatprep.mubr.f32.mxu0 %v3406_v0  ;;  %3279 = vmatprep.subr.bf16.mxu0 %v3278_v5  ;;  %v978_v14 = vrot.slane %v928_v6, %v3498_v31  ;;  %v1539_v15 = vrot.slane %v3491_v28, %v3643_v35  ;;  %v974_v25 = vrot.slane %v924_v2, %v3498_v31 }
  0x4e   : > { %3171 = vmatmul.mubr.msk.f32.gmra.mrb[14].mxu1 %vm431_vm0, %v3676_v4  ;;  %v1032_v16 = vsub.f32 1.0, %v1012_v7  ;;  %v1042_v19 = vsub.f32 1.0, %v1022_v8  ;;  %v970_v23 = vrot.slane %v920_v10, %v3498_v31  ;;  %v1045_v18 = vmax.f32 %v1025_v11, 0.0 }
  0x4f   : > { %1151 = vmatprep.mubr.f32.mxu1 %v3406_v0  ;;  %v991_v21 = vsub.f32 %v978_v14, %v3489_v27  ;;  %v1001_v22 = vsub.f32 %v978_v14, %v3495_v30  ;;  %v1589_v33 = vrot.slane %v1539_v15, %v3670_v3  ;;  %v990_v36 = vsub.f32 %v974_v25, %v3489_v27 }
  0x50   : > { %3160 = vmatmul.mubr.msk.f32.gmra.mrb[16].mxu0 %vm431_vm0, %v3557_v55  ;;  %v1052_v24 = vmax.f32 %v1032_v16, 0.0  ;;  %v1062_v34 = vmax.f32 %v1042_v19, 0.0  ;;  %v1000_v37 = vsub.f32 %v974_v25, %v3495_v30  ;;  %v1055_v38 = vmax.f32 %v1035_v12, 0.0 }
  0x51   : > { %704 = vmatprep.mubr.f32.mxu0 %v3406_v0  ;;  %v1011_v39 = vand.u32 2147483647, %v991_v21  ;;  %v1021_v40 = vand.u32 2147483647, %v1001_v22  ;;  %v1010_v41 = vand.u32 2147483647, %v990_v36  ;;  %v1617_v43 = vsub.f32 %v1589_v33, %v3489_v27 }
  0x52   : > { %3172 = vmatmul.mubr.msk.f32.gmra.mrb[16].mxu1 %vm431_vm0, %v3697_v20  ;;  %v3290_v31 = vpack.c.bf16 %v1062_v34, %v1052_v24  ;;  %v1020_v42 = vand.u32 2147483647, %v1000_v37  ;;  %v989_v51 = vsub.f32 %v970_v23, %v3489_v27  ;;  %v1627_v53 = vsub.f32 %v1589_v33, %v3495_v30 }
  0x53   : > { %1157 = vmatprep.mubr.f32.mxu1 %v3406_v0  ;;  %v1031_v17 = vsub.f32 1.0, %v1011_v39  ;;  %v1041_v46 = vsub.f32 1.0, %v1021_v40  ;;  %v1030_v47 = vsub.f32 1.0, %v1010_v41  ;;  %v1637_v54 = vand.u32 2147483647, %v1617_v43 }
  0x54   : > { %3161 = vmatmul.mubr.msk.f32.gmra.mrb[18].mxu0 %vm431_vm0, %v3580_v9  ;;  %3291 = vmatprep.subr.bf16.mxu1 %v3290_v31  ;;  %v1040_v52 = vsub.f32 1.0, %v1020_v42  ;;  %v3280_v56 = vpack.c.bf16 %v1055_v38, %v1045_v18  ;;  %v999_v48 = vsub.f32 %v970_v23, %v3495_v30  ;;  %v1647_v61 = vand.u32 2147483647, %v1627_v53 }
  0x55   : > { %864 = vmatprep.mubr.f32.mxu0 %v3406_v0  ;;  %v1051_v57 = vmax.f32 %v1031_v17, 0.0  ;;  %v1061_v58 = vmax.f32 %v1041_v46, 0.0  ;;  %v1050_v59 = vmax.f32 %v1030_v47, 0.0  ;;  %v1657_v62 = vsub.f32 1.0, %v1637_v54 }
  0x56   : > { %3173 = vmatmul.mubr.msk.f32.gmra.mrb[18].mxu1 %vm431_vm0, %v3715_v44  ;;  %v1060_v60 = vmax.f32 %v1040_v52, 0.0  ;;  %v1009_v49 = vand.u32 2147483647, %v989_v51  ;;  %v1535_v5 = vrot.slane %v3491_v28, %v3670_v3  ;;  %v1667_v7 = vsub.f32 1.0, %v1647_v61 }
  0x57   : > { %1317 = vmatprep.mubr.f32.mxu1 %v3406_v0  ;;  %v3292_v1 = vpack.c.bf16 %v1061_v58, %v1051_v57  ;;  %v1677_v8 = vmax.f32 %v1657_v62, 0.0  ;;  %v1531_v2 = vrot.slane %v3486_v26, %v3643_v35  ;;  %v1019_v10 = vand.u32 2147483647, %v999_v48 }
  0x58   : > { %3166 = vmatmul.mubr.msk.f32.vlgmr.msra.gmra.mrb[20].mxu0 %vm431_vm0, %v3548_v45  ;;  %v3286_v6 = vpack.c.bf16 %v1060_v60, %v1050_v59  ;;  %v1585_v11 = vrot.slane %v1535_v5, %v3670_v3  ;;  %v1687_v28 = vmax.f32 %v1667_v7, 0.0  ;;  %v1555_v45 = vrot.slane %v3493_v29, %v3643_v35 }
  0x59   : > { %870 = vmatprep.mubr.f32.mxu0 %v3406_v0  ;;  %3281 = vmatpush1.bf16.msra.mxu0 %v3280_v56  ;;  %v1581_v12 = vrot.slane %v1531_v2, %v3670_v3  ;;  %v1029_v14 = vsub.f32 1.0, %v1009_v49  ;;  %v1039_v23 = vsub.f32 1.0, %v1019_v10  ;;  %v1527_v34 = vrot.slane %v3486_v26, %v3670_v3 }
  0x5a   : > { %3178 = vmatmul.mubr.msk.f32.vlgmr.msra.gmra.mrb[20].mxu1 %vm431_vm0, %v3657_v50  ;;  %3287 = vmatprep.subr.bf16.mxu0 %v3286_v6  ;;  %v1616_v15 = vsub.f32 %v1585_v11, %v3489_v27  ;;  %v1626_v16 = vsub.f32 %v1585_v11, %v3495_v30  ;;  %v3298_v19 = vpack.c.bf16 %v1687_v28, %v1677_v8 }
  0x5b   : > { %1323 = vmatprep.mubr.f32.mxu1 %v3406_v0  ;;  %3293 = vmatpush1.bf16.msra.mxu1 %v3292_v1  ;;  %v1615_v25 = vsub.f32 %v1581_v12, %v3489_v27  ;;  %v1625_v21 = vsub.f32 %v1581_v12, %v3495_v30  ;;  %v1605_v22 = vrot.slane %v1555_v45, %v3670_v3  ;;  %v1049_v43 = vmax.f32 %v1029_v14, 0.0 }
  0x5c   : > { %3167 = vmatmul.mubr.msk.f32.gmra.mrb[22].mxu0 %vm431_vm0, %v3569_v63  ;;  %v1636_v33 = vand.u32 2147483647, %v1616_v15  ;;  %v1646_v24 = vand.u32 2147483647, %v1626_v16  ;;  %3299 = vmatprep.subr.bf16.mxu1 %v3298_v19  ;;  %v1551_v40 = vrot.slane %v3493_v29, %v3670_v3  ;;  %v1059_v17 = vmax.f32 %v1039_v23, 0.0 }
  0x5d   : > { %876 = vmatprep.mubr.f32.mxu0 %v3406_v0  ;;  %v1635_v63 = vand.u32 2147483647, %v1615_v25  ;;  %v1645_v36 = vand.u32 2147483647, %v1625_v21  ;;  %v1621_v37 = vsub.f32 %v1605_v22, %v3489_v27  ;;  %v1631_v18 = vsub.f32 %v1605_v22, %v3495_v30 }
  0x5e   : > { %3179 = vmatmul.mubr.msk.f32.gmra.mrb[22].mxu1 %vm431_vm0, %v3676_v4  ;;  %v1656_v38 = vsub.f32 1.0, %v1636_v33  ;;  %v1666_v39 = vsub.f32 1.0, %v1646_v24  ;;  %v1577_v46 = vrot.slane %v1527_v34, %v3670_v3  ;;  %v1601_v54 = vrot.slane %v1551_v40, %v3670_v3 }
  0x5f   : > { %1329 = vmatprep.mubr.f32.mxu1 %v3406_v0  ;;  %v1655_v26 = vsub.f32 1.0, %v1635_v63  ;;  %v1665_v31 = vsub.f32 1.0, %v1645_v36  ;;  %v1641_v41 = vand.u32 2147483647, %v1621_v37  ;;  %v1651_v42 = vand.u32 2147483647, %v1631_v18 }
  0x60   : > { %3168 = vmatmul.mubr.msk.f32.gmra.mrb[24].mxu0 %vm431_vm0, %v3557_v55  ;;  %v1676_v55 = vmax.f32 %v1656_v38, 0.0  ;;  %v1686_v53 = vmax.f32 %v1666_v39, 0.0  ;;  %v1547_v58 = vrot.slane %v3500_v32, %v3643_v35  ;;  %v3288_v48 = vpack.c.bf16 %v1059_v17, %v1049_v43 }
  0x61   : > { %882 = vmatprep.mubr.f32.mxu0 %v3406_v0  ;;  %v1675_v51 = vmax.f32 %v1655_v26, 0.0  ;;  %v1685_v47 = vmax.f32 %v1665_v31, 0.0  ;;  %v1661_v52 = vsub.f32 1.0, %v1641_v41  ;;  %v1671_v29 = vsub.f32 1.0, %v1651_v42  ;;  %v3817_v31 = vld [vmem:[%s4430_s3] sm:$0xff] }
  0x62   : > { %3180 = vmatmul.mubr.msk.f32.gmra.mrb[24].mxu1 %vm431_vm0, %v3697_v20  ;;  %v1614_v59 = vsub.f32 %v1577_v46, %v3489_v27  ;;  %v1624_v60 = vsub.f32 %v1577_v46, %v3495_v30  ;;  %v1597_v62 = vrot.slane %v1547_v58, %v3670_v3  ;;  %v1620_v1 = vsub.f32 %v1601_v54, %v3489_v27  ;;  %v1523_v58 = vld [vmem:[%s4430_s3 + $0x18] sm:$0xff] }
  0x63   : > { %1335 = vmatprep.mubr.f32.mxu1 %v3406_v0  ;;  %v1681_v56 = vmax.f32 %v1661_v52, 0.0  ;;  %v1691_v57 = vmax.f32 %v1671_v29, 0.0  ;;  %v3294_v61 = vpack.c.bf16 %v1685_v47, %v1675_v51  ;;  %v1630_v49 = vsub.f32 %v1601_v54, %v3495_v30  ;;  %v3828_v51 = vld [vmem:[%s4430_s3 + $0x8] sm:$0xff] }
  0x64   : > { %3169 = vmatmul.mubr.msk.f32.gmra.mrb[26].mxu0 %vm431_vm0, %v3580_v9  ;;  %v3300_v9 = vpack.c.bf16 %v1686_v53, %v1676_v55  ;;  %v1619_v6 = vsub.f32 %v1597_v62, %v3489_v27  ;;  %v1629_v7 = vsub.f32 %v1597_v62, %v3495_v30  ;;  %v1634_v8 = vand.u32 2147483647, %v1614_v59  ;;  %v1522_v53 = vld [vmem:[%s4430_s3 + $0x10] sm:$0xff] }
  0x65   : > { %1228 = vmatprep.mubr.f32.mxu0 %v3406_v0  ;;  %v3306_v5 = vpack.c.bf16 %v1691_v57, %v1681_v56  ;;  %v1644_v2 = vand.u32 2147483647, %v1624_v60  ;;  %v1640_v28 = vand.u32 2147483647, %v1620_v1  ;;  %v1650_v12 = vand.u32 2147483647, %v1630_v49 }
  0x66   : > { %3181 = vmatmul.mubr.msk.f32.gmra.mrb[26].mxu1 %vm431_vm0, %v3715_v44  ;;  %v1639_v10 = vand.u32 2147483647, %v1619_v6  ;;  %v1649_v11 = vand.u32 2147483647, %v1629_v7  ;;  %v1654_v45 = vsub.f32 1.0, %v1634_v8  ;;  %v1543_v15 = vrot.slane %v3500_v32, %v3670_v3 }
  0x67   : > { %1495 = vmatprep.mubr.f32.mxu1 %v3406_v0  ;;  %v1664_v14 = vsub.f32 1.0, %v1644_v2  ;;  %v1563_v25 = vrot.slane %v3584_v13, %v3643_v35  ;;  %v1660_v21 = vsub.f32 1.0, %v1640_v28  ;;  %v1670_v22 = vsub.f32 1.0, %v1650_v12 }
  0x68   : > { %3174 = vmatmul.mubr.msk.f32.vlgmr.msra.gmra.mrb[28].mxu0 %vm431_vm0, %v3657_v50  ;;  %v1659_v16 = vsub.f32 1.0, %v1639_v10  ;;  %v1669_v19 = vsub.f32 1.0, %v1649_v11  ;;  %v1674_v23 = vmax.f32 %v1654_v45, 0.0  ;;  %v1593_v32 = vrot.slane %v1543_v15, %v3670_v3 }
  0x69   : > { %1234 = vmatprep.mubr.f32.mxu0 %v3406_v0  ;;  %3289 = vmatpush1.bf16.msra.mxu0 %v3288_v48  ;;  %v1684_v33 = vmax.f32 %v1664_v14, 0.0  ;;  %v1613_v35 = vrot.slane %v1563_v25, %v3670_v3  ;;  %v1680_v63 = vmax.f32 %v1660_v21, 0.0  ;;  %v1690_v36 = vmax.f32 %v1670_v22, 0.0 }
  0x6a   : > { %3186 = vmatmul.mubr.msk.f32.vlgmr.msra.gmra.mrb[28].mxu1 %vm431_vm0, %v3657_v50  ;;  %3295 = vmatprep.subr.bf16.mxu0 %v3294_v61  ;;  %v1679_v24 = vmax.f32 %v1659_v16, 0.0  ;;  %v1689_v34 = vmax.f32 %v1669_v19, 0.0  ;;  %v1618_v18 = vsub.f32 %v1593_v32, %v3489_v27  ;;  %v1628_v38 = vsub.f32 %v1593_v32, %v3495_v30 }
  0x6b   : > { %1501 = vmatprep.mubr.f32.mxu1 %v3406_v0  ;;  %3301 = vmatpush1.bf16.msra.mxu1 %v3300_v9  ;;  %v3296_v37 = vpack.c.bf16 %v1684_v33, %v1674_v23  ;;  %v1623_v40 = vsub.f32 %v1613_v35, %v3489_v27  ;;  %v1633_v26 = vsub.f32 %v1613_v35, %v3495_v30 }
  0x6c   : > { %3175 = vmatmul.mubr.msk.f32.gmra.mrb[30].mxu0 %vm431_vm0, %v3676_v4  ;;  %3307 = vmatprep.subr.bf16.mxu1 %v3306_v5  ;;  %v3302_v39 = vpack.c.bf16 %v1689_v34, %v1679_v24  ;;  %v3308_v41 = vpack.c.bf16 %v1690_v36, %v1680_v63  ;;  %v1638_v42 = vand.u32 2147483647, %v1618_v18  ;;  %v1648_v43 = vand.u32 2147483647, %v1628_v38 }
  0x6d   : > { %1240 = vmatprep.mubr.f32.mxu0 %v3406_v0  ;;  %v1643_v17 = vand.u32 2147483647, %v1623_v40  ;;  %v1653_v46 = vand.u32 2147483647, %v1633_v26  ;;  %v1559_v52 = vrot.slane %v3584_v13, %v3670_v3 }
  0x6e   : > { %3187 = vmatmul.mubr.msk.f32.gmra.mrb[30].mxu1 %vm431_vm0, %v3676_v4  ;;  %v1668_v47 = vsub.f32 1.0, %v1648_v43 }
  0x6f   : > { %1507 = vmatprep.mubr.f32.mxu1 %v3406_v0  ;;  %v1663_v29 = vsub.f32 1.0, %v1643_v17  ;;  %v1673_v55 = vsub.f32 1.0, %v1653_v46  ;;  %v1609_v13 = vrot.slane %v1559_v52, %v3670_v3 }
  0x70   : > { %3176 = vmatmul.mubr.msk.f32.gmra.mrb[32].mxu0 %vm431_vm0, %v3697_v20  ;;  %v1688_v54 = vmax.f32 %v1668_v47, 0.0 }
  0x71   : > { %1246 = vmatprep.mubr.f32.mxu0 %v3406_v0  ;;  %v1683_v56 = vmax.f32 %v1663_v29, 0.0  ;;  %v1693_v57 = vmax.f32 %v1673_v55, 0.0  ;;  %v1622_v48 = vsub.f32 %v1609_v13, %v3489_v27  ;;  %v1632_v3 = vsub.f32 %v1609_v13, %v3495_v30 }
  0x72   : > { %3188 = vmatmul.mubr.msk.f32.gmra.mrb[32].mxu1 %vm431_vm0, %v3697_v20 }
  0x73   : > { %1513 = vmatprep.mubr.f32.mxu1 %v3406_v0  ;;  %v3310_v59 = vpack.c.bf16 %v1693_v57, %v1683_v56  ;;  %v1642_v60 = vand.u32 2147483647, %v1622_v48 }
  0x74   : > { %3177 = vmatmul.mubr.msk.f32.gmra.mrb[34].mxu0 %vm431_vm0, %v3715_v44 }
  0x75   : > { %1406 = vmatprep.mubr.f32.mxu0 %v3406_v0  ;;  %v1662_v27 = vsub.f32 1.0, %v1642_v60 }
  0x76   : > { %3189 = vmatmul.mubr.msk.f32.gmra.mrb[34].mxu1 %vm431_vm0, %v3715_v44 }
  0x77   : > { %1859 = vmatprep.mubr.f32.mxu1 %v3406_v0  ;;  %v1682_v61 = vmax.f32 %v1662_v27, 0.0 }
  0x78   : > { %3182 = vmatmul.mubr.msk.f32.vlgmr.msra.gmra.mrb[36].mxu0 %vm431_vm0, %v3657_v50  ;;  %v1658_v50 = vsub.f32 1.0, %v1638_v42 }
  0x79   : > { %1412 = vmatprep.mubr.f32.mxu0 %v3406_v0  ;;  %3297 = vmatpush1.bf16.msra.mxu0 %v3296_v37 }
  0x7a   : > { %3194 = vmatmul.mubr.msk.f32.vlgmr.msra.gmra.mrb[36].mxu1 %vm431_vm0, %v3817_v31  ;;  %3303 = vmatprep.subr.bf16.mxu0 %v3302_v39 }
  0x7b   : > { %1865 = vmatprep.mubr.f32.mxu1 %v3406_v0  ;;  %3309 = vmatpush1.bf16.msra.mxu1 %v3308_v41 }
  0x7c   : > { %3183 = vmatmul.mubr.msk.f32.gmra.mrb[38].mxu0 %vm431_vm0, %v3676_v4  ;;  %v1678_v4 = vmax.f32 %v1658_v50, 0.0 }
  0x7d   : > { %1418 = vmatprep.mubr.f32.mxu0 %v3406_v0 }
  0x7e   : > { %3195 = vmatmul.mubr.msk.f32.gmra.mrb[38].mxu1 %vm431_vm0, %v3828_v51 }
  0x7f   : > { %1871 = vmatprep.mubr.f32.mxu1 %v3406_v0 }
  0x80   : > { %3184 = vmatmul.mubr.msk.f32.gmra.mrb[40].mxu0 %vm431_vm0, %v3697_v20  ;;  %v3304_v20 = vpack.c.bf16 %v1688_v54, %v1678_v4 }
  0x81   : > { %1424 = vmatprep.mubr.f32.mxu0 %v3406_v0 }
  0x82   : > { %3196 = vmatmul.mubr.msk.f32.gmra.mrb[40].mxu1 %vm431_vm0, %v1522_v53 }
  0x83   : > { %1877 = vmatprep.mubr.f32.mxu1 %v3406_v0 }
  0x84   : > { %3185 = vmatmul.mubr.msk.f32.gmra.mrb[42].mxu0 %vm431_vm0, %v3715_v44  ;;  %v1652_v44 = vand.u32 2147483647, %v1632_v3 }
  0x85   : > { %1770 = vmatprep.mubr.f32.mxu0 %v3406_v0 }
  0x86   : > { %3197 = vmatmul.mubr.msk.f32.gmra.mrb[42].mxu1 %vm431_vm0, %v1523_v58  ;;  %v1672_v30 = vsub.f32 1.0, %v1652_v44 }
  0x87   : > { %2037 = vmatprep.mubr.f32.mxu1 %v3406_v0 }
  0x88   : > { %3190 = vmatmul.mubr.msk.f32.vlgmr.msra.gmra.mrb[44].mxu0 %vm431_vm0, %v3817_v31  ;;  %v1692_v62 = vmax.f32 %v1672_v30, 0.0 }
  0x89   : > { %1776 = vmatprep.mubr.f32.mxu0 %v3406_v0  ;;  %3305 = vmatpush1.bf16.msra.mxu0 %v3304_v20 }
  0x8a   : > { %3202 = vmatmul.mubr.msk.f32.vlgmr.msra.gmra.mrb[44].mxu1 %vm431_vm0, %v3817_v31  ;;  %3311 = vmatprep.subr.bf16.mxu0 %v3310_v59  ;;  %v3312_v9 = vpack.c.bf16 %v1692_v62, %v1682_v61 }
  0x8b   : > { %2043 = vmatprep.mubr.f32.mxu1 %v3406_v0 }
  0x8c   : > { %3191 = vmatmul.mubr.msk.f32.gmra.mrb[46].mxu0 %vm431_vm0, %v3828_v51 }
  0x8d   : > { %1782 = vmatprep.mubr.f32.mxu0 %v3406_v0 }
  0x8e   : > { %3203 = vmatmul.mubr.msk.f32.gmra.mrb[46].mxu1 %vm431_vm0, %v3828_v51 }
  0x8f   : > { %2049 = vmatprep.mubr.f32.mxu1 %v3406_v0 }
  0x90   : > { %3192 = vmatmul.mubr.msk.f32.gmra.mrb[48].mxu0 %vm431_vm0, %v1522_v53 }
  0x91   : > { %1788 = vmatprep.mubr.f32.mxu0 %v3406_v0 }
  0x92   : > { %3204 = vmatmul.mubr.msk.f32.gmra.mrb[48].mxu1 %vm431_vm0, %v1522_v53 }
  0x93   : > { %2055 = vmatprep.mubr.f32.mxu1 %v3406_v0 }
  0x94   : > { %3193 = vmatmul.mubr.msk.f32.gmra.mrb[50].mxu0 %vm431_vm0, %v1523_v58 }
  0x95   : > { %1948 = vmatprep.mubr.f32.mxu0 %v3406_v0 }
  0x96   : > { %3205 = vmatmul.mubr.msk.f32.gmra.mrb[50].mxu1 %vm431_vm0, %v1523_v58 }
  0x97   : > { %2328 = vmatprep.mubr.f32.mxu1 %v3406_v0 }
  0x98   : > { %3198 = vmatmul.mubr.msk.f32.vlgmr.msra.gmra.mrb[52].mxu0 %vm431_vm0, %v3817_v31 }
  0x99   : > { %1954 = vmatprep.mubr.f32.mxu0 %v3406_v0  ;;  %3313 = vmatpush1.bf16.msra.mxu0 %v3312_v9 }
  0x9c   : > { %3199 = vmatmul.mubr.msk.f32.gmra.mrb[54].mxu0 %vm431_vm0, %v3828_v51 }
  0x9d   : > { %1960 = vmatprep.mubr.f32.mxu0 %v3406_v0 }
  0xa0   : > { %3200 = vmatmul.mubr.msk.f32.gmra.mrb[56].mxu0 %vm431_vm0, %v1522_v53 }
  0xa1   : > { %1966 = vmatprep.mubr.f32.mxu0 %v3406_v0 }
  0xa4   : > { %3201 = vmatmul.mubr.msk.f32.gmra.mrb[58].mxu0 %vm431_vm0, %v1523_v58 }
  0xa5   : > { %2126 = vmatprep.mubr.f32.mxu0 %v3406_v0 }
  0xa8   : > { %3206 = vmatmul.mubr.msk.f32.vlgmr.msra.gmra.mrb[60].mxu0 %vm431_vm0, %v3817_v31 }
  0xa9   : > { %2132 = vmatprep.mubr.f32.mxu0 %v3406_v0 }
  0xac   : > { %3207 = vmatmul.mubr.msk.f32.gmra.mrb[62].mxu0 %vm431_vm0, %v3828_v51 }
  0xad   : > { %2138 = vmatprep.mubr.f32.mxu0 %v3406_v0 }
  0xb0   : > { %3208 = vmatmul.mubr.msk.f32.gmra.mrb[64].mxu0 %vm431_vm0, %v1522_v53 }
  0xb1   : > { %2144 = vmatprep.mubr.f32.mxu0 %v3406_v0 }
  0xb4   : > { %3209 = vmatmul.mubr.msk.f32.gmra.mrb[66].mxu0 %vm431_vm0, %v1523_v58 }
  0xb5   : > { %2441 = vmatprep.mubr.f32.mxu0 %v3406_v0 }
 0x103   : > { %v510_v1 = vpop.f32.mrb[0].mxu0 }
 0x104   : > { %v512_v49 = vpop.f32.mrb[1].mxu0 }
 0x105   : > { %v3897_v5 = vpop.f32.mrb[0].mxu1 }
 0x106   : > { %v3899_v6 = vpop.f32.mrb[1].mxu1 }
 0x107   : > { %v516_v7 = vpop.f32.mrb[2].mxu0 }
 0x108   : > { %v518_v8 = vpop.f32.mrb[3].mxu0 }
 0x109   : > { %v3901_v2 = vpop.f32.mrb[2].mxu1 }
 0x10a   : > { %v3903_v10 = vpop.f32.mrb[3].mxu1 }
 0x10b   : > { %v522_v11 = vpop.f32.mrb[4].mxu0 }
 0x10c   : > { %v524_v28 = vpop.f32.mrb[5].mxu0 }
 0x10d   : > { %v3905_v12 = vpop.f32.mrb[4].mxu1 }
 0x10e   : > { %v3907_v45 = vpop.f32.mrb[5].mxu1 }
 0x10f   : > { %v528_v14 = vpop.f32.mrb[6].mxu0 }
 0x110   : > { %v530_v15 = vpop.f32.mrb[7].mxu0 }
 0x111   : > { %v3909_v16 = vpop.f32.mrb[6].mxu1 }
 0x112   : > { %v3911_v19 = vpop.f32.mrb[7].mxu1 }
 0x113   : > { %v599_v25 = vpop.f32.mrb[8].mxu0 }
 0x114   : > { %v601_v21 = vpop.f32.mrb[9].mxu0 }
 0x115   : > { %v3913_v22 = vpop.f32.mrb[8].mxu1 }
 0x116   : > { %v3915_v23 = vpop.f32.mrb[9].mxu1 }
 0x117   : > { %v605_v33 = vpop.f32.mrb[10].mxu0 }
 0x118   : > { %v3917_v32 = vpop.f32.mrb[11].mxu0 }
 0x119   : > { %v3919_v24 = vpop.f32.mrb[10].mxu1 }
 0x11a   : > { %v3921_v34 = vpop.f32.mrb[11].mxu1 }
 0x11b   : > { %v688_v35 = vpop.f32.mrb[12].mxu0 }
 0x11c   : > { %v690_v63 = vpop.f32.mrb[13].mxu0 }
 0x11d   : > { %v1141_v36 = vpop.f32.mrb[12].mxu1 }
 0x11e   : > { %v3923_v37 = vmul.f32 %v1141_v36, %v510_v1  ;;  %v1143_v18 = vpop.f32.mrb[13].mxu1 }
 0x11f   : > { %v3925_v38 = vmul.f32 %v1143_v18, %v512_v49  ;;  %v694_v39 = vpop.f32.mrb[14].mxu0 }
 0x120   : > { %v696_v40 = vpop.f32.mrb[15].mxu0 }
 0x121   : > { %v1147_v26 = vpop.f32.mrb[14].mxu1 }
 0x122   : > { %v3927_v31 = vmul.f32 %v1147_v26, %v516_v7  ;;  %v1149_v41 = vpop.f32.mrb[15].mxu1 }
 0x123   : > { %v3929_v42 = vmul.f32 %v1149_v41, %v518_v8  ;;  %v700_v43 = vpop.f32.mrb[16].mxu0 }
 0x124   : > { %v702_v17 = vpop.f32.mrb[17].mxu0 }
 0x125   : > { %v1153_v46 = vpop.f32.mrb[16].mxu1 }
 0x126   : > { %v3931_v51 = vmul.f32 %v1153_v46, %v522_v11  ;;  %v1155_v50 = vpop.f32.mrb[17].mxu1 }
 0x127   : > { %v3933_v47 = vmul.f32 %v1155_v50, %v524_v28  ;;  %v706_v52 = vpop.f32.mrb[18].mxu0 }
 0x128   : > { %v708_v29 = vpop.f32.mrb[19].mxu0 }
 0x129   : > { %v1159_v55 = vpop.f32.mrb[18].mxu1 }
 0x12a   : > { %v3935_v53 = vmul.f32 %v1159_v55, %v528_v14  ;;  %v1161_v4 = vpop.f32.mrb[19].mxu1 }
 0x12b   : > { %v3937_v54 = vmul.f32 %v1161_v4, %v530_v15  ;;  %v866_v13 = vpop.f32.mrb[20].mxu0 }
 0x12c   : > { %v868_v56 = vpop.f32.mrb[21].mxu0 }
 0x12d   : > { %v1319_v57 = vpop.f32.mrb[20].mxu1 }
 0x12e   : > { %v3939_v58 = vmul.f32 %v1319_v57, %v688_v35  ;;  %v1321_v20 = vpop.f32.mrb[21].mxu1 }
 0x12f   : > { %v3941_v48 = vmul.f32 %v1321_v20, %v690_v63  ;;  %v872_v3 = vpop.f32.mrb[22].mxu0 }
 0x130   : > { %v874_v59 = vpop.f32.mrb[23].mxu0 }
 0x131   : > { %v1325_v60 = vpop.f32.mrb[22].mxu1 }
 0x132   : > { %v3943_v44 = vmul.f32 %v1325_v60, %v694_v39  ;;  %v1327_v27 = vpop.f32.mrb[23].mxu1 }
 0x133   : > { %v3945_v30 = vmul.f32 %v1327_v27, %v696_v40  ;;  %v878_v61 = vpop.f32.mrb[24].mxu0 }
 0x134   : > { %v880_v62 = vpop.f32.mrb[25].mxu0 }
 0x135   : > { %v1331_v9 = vpop.f32.mrb[24].mxu1 }
 0x136   : > { %v3947_v1 = vmul.f32 %v1331_v9, %v700_v43  ;;  %v1333_v49 = vpop.f32.mrb[25].mxu1 }
 0x137   : > { %v3949_v7 = vmul.f32 %v1333_v49, %v702_v17  ;;  %v884_v8 = vpop.f32.mrb[26].mxu0 }
 0x138   : > { %v886_v11 = vpop.f32.mrb[27].mxu0 }
 0x139   : > { %v1337_v28 = vpop.f32.mrb[26].mxu1 }
 0x13a   : > { %v3951_v14 = vmul.f32 %v1337_v28, %v706_v52  ;;  %v1339_v15 = vpop.f32.mrb[27].mxu1 }
 0x13b   : > { %v3953_v35 = vmul.f32 %v1339_v15, %v708_v29  ;;  %v1230_v63 = vpop.f32.mrb[28].mxu0 }
 0x13c   : > { %v2153_v36 = vmul.f32 %v1230_v63, %v599_v25  ;;  %v1232_v18 = vpop.f32.mrb[29].mxu0 }
 0x13d   : > { %v1497_v39 = vpop.f32.mrb[28].mxu1  ;;  %v2154_v40 = vmul.f32 %v1232_v18, %v601_v21 }
 0x13e   : > { %v3955_v26 = vmul.f32 %v1497_v39, %v866_v13  ;;  %v1499_v41 = vpop.f32.mrb[29].mxu1 }
 0x13f   : > { %v3957_v43 = vmul.f32 %v1499_v41, %v868_v56  ;;  %v1236_v17 = vpop.f32.mrb[30].mxu0 }
 0x140   : > { %v2163_v46 = vmul.f32 %v1236_v17, %v605_v33  ;;  %v1238_v50 = vpop.f32.mrb[31].mxu0 }
 0x141   : > { %v1503_v55 = vpop.f32.mrb[30].mxu1  ;;  %v2164_v52 = vmul.f32 %v1238_v50, %v3917_v32 }
 0x142   : > { %v3960_v4 = vmul.f32 %v1503_v55, %v872_v3  ;;  %v1505_v29 = vpop.f32.mrb[31].mxu1 }
 0x143   : > { %v3962_v57 = vmul.f32 %v1505_v29, %v874_v59  ;;  %v1242_v25 = vpop.f32.mrb[32].mxu0 }
 0x144   : > { %v2173_v20 = vmul.f32 %v1242_v25, %v3897_v5  ;;  %v1244_v21 = vpop.f32.mrb[33].mxu0 }
 0x145   : > { %v1509_v13 = vpop.f32.mrb[32].mxu1  ;;  %v2174_v60 = vmul.f32 %v1244_v21, %v3899_v6 }
 0x146   : > { %v3966_v56 = vmul.f32 %v1509_v13, %v878_v61  ;;  %v1511_v27 = vpop.f32.mrb[33].mxu1 }
 0x147   : > { %v3968_v33 = vmul.f32 %v1511_v27, %v880_v62  ;;  %v1248_v9 = vpop.f32.mrb[34].mxu0 }
 0x148   : > { %v2183_v32 = vmul.f32 %v1248_v9, %v3901_v2  ;;  %v1250_v3 = vpop.f32.mrb[35].mxu0 }
 0x149   : > { %v1515_v49 = vpop.f32.mrb[34].mxu1  ;;  %v2184_v59 = vmul.f32 %v1250_v3, %v3903_v10 }
 0x14a   : > { %v3972_v28 = vmul.f32 %v1515_v49, %v884_v8  ;;  %v1517_v15 = vpop.f32.mrb[35].mxu1 }
 0x14b   : > { %v3974_v5 = vmul.f32 %v1517_v15, %v886_v11  ;;  %v1408_v63 = vpop.f32.mrb[36].mxu0 }
 0x14c   : > { %v2157_v6 = vmul.f32 %v1408_v63, %v3905_v12  ;;  %v1410_v61 = vpop.f32.mrb[37].mxu0 }
 0x14d   : > { %v1861_v18 = vpop.f32.mrb[36].mxu1  ;;  %v2158_v62 = vmul.f32 %v1410_v61, %v3907_v45 }
 0x14e   : > { %v2193_v39 = vmul.f32 %v2153_v36, %v1861_v18  ;;  %v1863_v41 = vpop.f32.mrb[37].mxu1 }
 0x14f   : > { %v2194_v17 = vmul.f32 %v2154_v40, %v1863_v41  ;;  %v1414_v2 = vpop.f32.mrb[38].mxu0 }
 0x150   : > { %v2167_v50 = vmul.f32 %v1414_v2, %v3909_v16  ;;  %v1416_v55 = vpop.f32.mrb[39].mxu0 }
 0x151   : > { %v1867_v10 = vpop.f32.mrb[38].mxu1  ;;  %v2168_v8 = vmul.f32 %v1416_v55, %v3911_v19 }
 0x152   : > { %v2203_v29 = vmul.f32 %v2163_v46, %v1867_v10  ;;  %v1869_v11 = vpop.f32.mrb[39].mxu1 }
 0x153   : > { %v2204_v25 = vmul.f32 %v2164_v52, %v1869_v11  ;;  %v1420_v21 = vpop.f32.mrb[40].mxu0 }
 0x154   : > { %v3324_v13 = vpack.c.bf16 %v2203_v29, %v2193_v39  ;;  %v2177_v12 = vmul.f32 %v1420_v21, %v3913_v22  ;;  %v1422_v27 = vpop.f32.mrb[41].mxu0 }
 0x155   : > { %v3322_v9 = vpack.c.bf16 %v2204_v25, %v2194_v17  ;;  %v1873_v45 = vpop.f32.mrb[40].mxu1  ;;  %v2178_v36 = vmul.f32 %v1422_v27, %v3915_v23 }
 0x156   : > { %v2213_v40 = vmul.f32 %v2173_v20, %v1873_v45  ;;  %v1875_v3 = vpop.f32.mrb[41].mxu1 }
 0x157   : > { %v2214_v49 = vmul.f32 %v2174_v60, %v1875_v3  ;;  %3323 = vmatprep.subr.bf16.mxu0 %v3322_v9  ;;  %v1426_v16 = vpop.f32.mrb[42].mxu0 }
 0x158   : > { %3325 = vmatpush1.bf16.msra.mxu0 %v3324_v13  ;;  %v2187_v19 = vmul.f32 %v1426_v16, %v3919_v24  ;;  %v1428_v46 = vpop.f32.mrb[43].mxu0 }
 0x159   : > { %v1879_v15 = vpop.f32.mrb[42].mxu1  ;;  %v2188_v52 = vmul.f32 %v1428_v46, %v3921_v34 }
 0x15a   : > { %v2223_v63 = vmul.f32 %v2183_v32, %v1879_v15  ;;  %v1881_v61 = vpop.f32.mrb[43].mxu1 }
 0x15b   : > { %v2224_v22 = vmul.f32 %v2184_v59, %v1881_v61  ;;  %v1772_v18 = vpop.f32.mrb[44].mxu0  ;;  %v3990_v59 = vld [vmem:[%s4431_s4] sm:$0xff] }
 0x15c   : > { %v3328_v39 = vpack.c.bf16 %v2223_v63, %v2213_v40  ;;  %v2191_v41 = vmul.f32 %v3923_v37, %v1772_v18  ;;  %v1774_v23 = vpop.f32.mrb[45].mxu0 }
 0x15d   : > { %v3326_v20 = vpack.c.bf16 %v2224_v22, %v2214_v49  ;;  %v2039_v17 = vpop.f32.mrb[44].mxu1  ;;  %v2192_v60 = vmul.f32 %v3925_v38, %v1774_v23  ;;  %v4021_v23 = vld [vmem:[%s4431_s4 + $0x18] sm:$0xff] }
 0x15e   : > { %v2197_v2 = vmul.f32 %v2157_v6, %v2039_v17  ;;  %v2041_v55 = vpop.f32.mrb[45].mxu1 }
 0x15f   : > { %v2198_v10 = vmul.f32 %v2158_v62, %v2041_v55  ;;  %3327 = vmatprep.subr.bf16.mxu0 %v3326_v20  ;;  %v1778_v24 = vpop.f32.mrb[46].mxu0 }
 0x160   : > { %3329 = vmatpush1.bf16.msra.mxu0 %v3328_v39  ;;  %v2201_v34 = vmul.f32 %v3927_v31, %v1778_v24  ;;  %v1780_v32 = vpop.f32.mrb[47].mxu0  ;;  %v4047_v24 = vld [vmem:[%s4431_s4 + $0x28] sm:$0xff] }
 0x161   : > { %v2045_v37 = vpop.f32.mrb[46].mxu1  ;;  %v2202_v29 = vmul.f32 %v3929_v42, %v1780_v32 }
 0x162   : > { %v3316_v11 = vpack.c.bf16 %v2201_v34, %v2191_v41  ;;  %v2207_v38 = vmul.f32 %v2167_v50, %v2045_v37  ;;  %v2047_v6 = vpop.f32.mrb[47].mxu1 }
 0x163   : > { %v3314_v25 = vpack.c.bf16 %v2202_v29, %v2192_v60  ;;  %v2208_v62 = vmul.f32 %v2168_v8, %v2047_v6  ;;  %v1784_v21 = vpop.f32.mrb[48].mxu0  ;;  %3218 = vmatmul.mubr.msk.f32.vlgmr.msra.gmra.mrb[68].mxu0 %vm2239_vm1, %v3990_v59  ;;  %v4001_v8 = vld [vmem:[%s4431_s4 + $0x8] sm:$0xff]  ;;  %v4034_v60 = vld [vmem:[%s4431_s4 + $0x20] sm:$0xff]  ;;  %v4060_v29 = vld [vmem:[%s4431_s4 + $0x30] sm:$0xff] }
 0x164   : > { %v3340_v31 = vpack.c.bf16 %v2207_v38, %v2197_v2  ;;  %v2211_v13 = vmul.f32 %v3931_v51, %v1784_v21  ;;  %v1786_v27 = vpop.f32.mrb[49].mxu0  ;;  %2447 = vmatprep.mubr.f32.mxu0 %v3406_v0 }
 0x165   : > { %v3338_v9 = vpack.c.bf16 %v2208_v62, %v2198_v10  ;;  %v2051_v45 = vpop.f32.mrb[48].mxu1  ;;  %v2212_v40 = vmul.f32 %v3933_v47, %v1786_v27  ;;  %3315 = vmatprep.subr.bf16.mxu1 %v3314_v25  ;;  %v4073_v25 = vld [vmem:[%s4431_s4 + $0x38] sm:$0xff] }
 0x166   : > { %v2217_v42 = vmul.f32 %v2177_v12, %v2051_v45  ;;  %v2053_v50 = vpop.f32.mrb[49].mxu1  ;;  %3317 = vmatpush1.bf16.msra.mxu1 %v3316_v11 }
 0x167   : > { %v2218_v3 = vmul.f32 %v2178_v36, %v2053_v50  ;;  %3339 = vmatprep.subr.bf16.mxu0 %v3338_v9  ;;  %v1790_v49 = vpop.f32.mrb[50].mxu0  ;;  %3219 = vmatmul.mubr.msk.f32.gmra.mrb[70].mxu0 %vm2239_vm1, %v4001_v8  ;;  %v4011_v36 = vld [vmem:[%s4431_s4 + $0x10] sm:$0xff] }
 0x168   : > { %3341 = vmatpush1.bf16.msra.mxu0 %v3340_v31  ;;  %v2221_v51 = vmul.f32 %v3935_v53, %v1790_v49  ;;  %v1792_v16 = vpop.f32.mrb[51].mxu0  ;;  %2453 = vmatprep.mubr.f32.mxu0 %v3406_v0 }
 0x169   : > { %v2057_v47 = vpop.f32.mrb[50].mxu1  ;;  %v2222_v12 = vmul.f32 %v3937_v54, %v1792_v16 }
 0x16a   : > { %v3320_v46 = vpack.c.bf16 %v2221_v51, %v2211_v13  ;;  %v2227_v15 = vmul.f32 %v2187_v19, %v2057_v47  ;;  %v2059_v63 = vpop.f32.mrb[51].mxu1 }
 0x16b   : > { %v3318_v61 = vpack.c.bf16 %v2222_v12, %v2212_v40  ;;  %v2228_v22 = vmul.f32 %v2188_v52, %v2059_v63  ;;  %v1950_v18 = vpop.f32.mrb[52].mxu0  ;;  %3220 = vmatmul.mubr.msk.f32.gmra.mrb[72].mxu0 %vm2239_vm1, %v4011_v36 }
 0x16c   : > { %v3344_v53 = vpack.c.bf16 %v2227_v15, %v2217_v42  ;;  %v2195_v39 = vmul.f32 %v3939_v58, %v1950_v18  ;;  %v1952_v41 = vpop.f32.mrb[53].mxu0  ;;  %2459 = vmatprep.mubr.f32.mxu0 %v3406_v0 }
 0x16d   : > { %v3342_v54 = vpack.c.bf16 %v2228_v22, %v2218_v3  ;;  %v2196_v19 = vmul.f32 %v3941_v48, %v1952_v41  ;;  %3319 = vmatprep.subr.bf16.mxu1 %v3318_v61 }
 0x16e   : > { %3321 = vmatpush1.bf16.msra.mxu1 %v3320_v46 }
 0x16f   : > { %3343 = vmatprep.subr.bf16.mxu0 %v3342_v54  ;;  %v1956_v52 = vpop.f32.mrb[54].mxu0  ;;  %3221 = vmatmul.mubr.msk.f32.gmra.mrb[74].mxu0 %vm2239_vm1, %v4021_v23 }
 0x170   : > { %3345 = vmatpush1.bf16.msra.mxu0 %v3344_v53  ;;  %v2205_v58 = vmul.f32 %v3943_v44, %v1956_v52  ;;  %v1958_v20 = vpop.f32.mrb[55].mxu0  ;;  %2465 = vmatprep.mubr.f32.mxu0 %v3406_v0 }
 0x171   : > { %v2206_v48 = vmul.f32 %v3945_v30, %v1958_v20  ;;  %3210 = vmatmul.mubr.msk.f32.vlgmr.msra.gmra.mrb[52].mxu1 %vm2239_vm1, %v3990_v59 }
 0x172   : > { %v3332_v17 = vpack.c.bf16 %v2205_v58, %v2195_v39  ;;  %2334 = vmatprep.mubr.f32.mxu1 %v3406_v0 }
 0x173   : > { %v3330_v2 = vpack.c.bf16 %v2206_v48, %v2196_v19  ;;  %v1962_v55 = vpop.f32.mrb[56].mxu0  ;;  %3222 = vmatmul.mubr.msk.f32.gmra.mrb[76].mxu0 %vm2239_vm1, %v4034_v60 }
 0x174   : > { %v2215_v44 = vmul.f32 %v3947_v1, %v1962_v55  ;;  %v1964_v10 = vpop.f32.mrb[57].mxu0  ;;  %2471 = vmatprep.mubr.f32.mxu0 %v3406_v0 }
 0x175   : > { %v2216_v30 = vmul.f32 %v3949_v7, %v1964_v10  ;;  %3211 = vmatmul.mubr.msk.f32.gmra.mrb[54].mxu1 %vm2239_vm1, %v4001_v8  ;;  %3331 = vmatprep.subr.bf16.mxu1 %v3330_v2 }
 0x176   : > { %3333 = vmatpush1.bf16.msra.mxu1 %v3332_v17  ;;  %2340 = vmatprep.mubr.f32.mxu1 %v3406_v0 }
 0x177   : > { %v1968_v34 = vpop.f32.mrb[58].mxu0  ;;  %3223 = vmatmul.mubr.msk.f32.gmra.mrb[78].mxu0 %vm2239_vm1, %v4047_v24 }
 0x178   : > { %v2225_v1 = vmul.f32 %v3951_v14, %v1968_v34  ;;  %v1970_v32 = vpop.f32.mrb[59].mxu0  ;;  %2477 = vmatprep.mubr.f32.mxu0 %v3406_v0 }
 0x179   : > { %v2226_v7 = vmul.f32 %v3953_v35, %v1970_v32  ;;  %3212 = vmatmul.mubr.msk.f32.gmra.mrb[56].mxu1 %vm2239_vm1, %v4011_v36 }
 0x17a   : > { %v3336_v37 = vpack.c.bf16 %v2225_v1, %v2215_v44  ;;  %2346 = vmatprep.mubr.f32.mxu1 %v3406_v0 }
 0x17b   : > { %v3334_v11 = vpack.c.bf16 %v2226_v7, %v2216_v30  ;;  %v2128_v38 = vpop.f32.mrb[60].mxu0  ;;  %3224 = vmatmul.mubr.msk.f32.gmra.mrb[80].mxu0 %vm2239_vm1, %v4060_v29 }
 0x17c   : > { %v2199_v14 = vmul.f32 %v3955_v26, %v2128_v38  ;;  %v2130_v6 = vpop.f32.mrb[61].mxu0  ;;  %2483 = vmatprep.mubr.f32.mxu0 %v3406_v0 }
 0x17d   : > { %v2200_v35 = vmul.f32 %v3957_v43, %v2130_v6  ;;  %3213 = vmatmul.mubr.msk.f32.gmra.mrb[58].mxu1 %vm2239_vm1, %v4021_v23  ;;  %3335 = vmatprep.subr.bf16.mxu1 %v3334_v11 }
 0x17e   : > { %3337 = vmatpush1.bf16.msra.mxu1 %v3336_v37  ;;  %2352 = vmatprep.mubr.f32.mxu1 %v3406_v0 }
 0x17f   : > { %v2134_v62 = vpop.f32.mrb[62].mxu0  ;;  %3225 = vmatmul.mubr.msk.f32.gmra.mrb[82].mxu0 %vm2239_vm1, %v4073_v25 }
 0x180   : > { %v2209_v26 = vmul.f32 %v3960_v4, %v2134_v62  ;;  %v2136_v21 = vpop.f32.mrb[63].mxu0  ;;  %2667 = vmatprep.mubr.f32.mxu0 %v3406_v0 }
 0x181   : > { %v2210_v43 = vmul.f32 %v3962_v57, %v2136_v21  ;;  %3214 = vmatmul.mubr.msk.f32.gmra.mrb[60].mxu1 %vm2239_vm1, %v4034_v60 }
 0x182   : > { %v3348_v31 = vpack.c.bf16 %v2209_v26, %v2199_v14  ;;  %2358 = vmatprep.mubr.f32.mxu1 %v3406_v0 }
 0x183   : > { %v3346_v13 = vpack.c.bf16 %v2210_v43, %v2200_v35  ;;  %v2140_v27 = vpop.f32.mrb[64].mxu0  ;;  %3234 = vmatmul.mubr.msk.f32.vlgmr.msra.gmra.mrb[84].mxu0 %vm2239_vm1, %v3990_v59 }
 0x184   : > { %v2219_v9 = vmul.f32 %v3966_v56, %v2140_v27  ;;  %v2142_v45 = vpop.f32.mrb[65].mxu0  ;;  %2673 = vmatprep.mubr.f32.mxu0 %v3406_v0 }
 0x185   : > { %v2220_v4 = vmul.f32 %v3968_v33, %v2142_v45  ;;  %3215 = vmatmul.mubr.msk.f32.gmra.mrb[62].mxu1 %vm2239_vm1, %v4047_v24  ;;  %3347 = vmatprep.subr.bf16.mxu1 %v3346_v13 }
 0x186   : > { %2364 = vmatprep.mubr.f32.mxu1 %v3406_v0 }
 0x187   : > { %v2146_v57 = vpop.f32.mrb[66].mxu0  ;;  %3235 = vmatmul.mubr.msk.f32.gmra.mrb[86].mxu0 %vm2239_vm1, %v4001_v8 }
 0x188   : > { %v2229_v40 = vmul.f32 %v3972_v28, %v2146_v57  ;;  %v2148_v42 = vpop.f32.mrb[67].mxu0  ;;  %2679 = vmatprep.mubr.f32.mxu0 %v3406_v0 }
 0x189   : > { %v2230_v56 = vmul.f32 %v3974_v5, %v2148_v42  ;;  %3216 = vmatmul.mubr.msk.f32.gmra.mrb[64].mxu1 %vm2239_vm1, %v4060_v29 }
 0x18a   : > { %v3352_v33 = vpack.c.bf16 %v2229_v40, %v2219_v9  ;;  %2370 = vmatprep.mubr.f32.mxu1 %v3406_v0 }
 0x18b   : > { %v3350_v50 = vpack.c.bf16 %v2230_v56, %v2220_v4  ;;  %3236 = vmatmul.mubr.msk.f32.gmra.mrb[88].mxu0 %vm2239_vm1, %v4011_v36 }
 0x18c   : > { %2685 = vmatprep.mubr.f32.mxu0 %v3406_v0 }
 0x18d   : > { %3217 = vmatmul.mubr.msk.f32.gmra.mrb[66].mxu1 %vm2239_vm1, %v4073_v25 }
 0x18e   : > { %2554 = vmatprep.mubr.f32.mxu1 %v3406_v0 }
 0x18f   : > { %3237 = vmatmul.mubr.msk.f32.gmra.mrb[90].mxu0 %vm2239_vm1, %v4021_v23 }
 0x190   : > { %2691 = vmatprep.mubr.f32.mxu0 %v3406_v0 }
 0x191   : > { %3226 = vmatmul.mubr.msk.f32.vlgmr.msra.gmra.mrb[68].mxu1 %vm2239_vm1, %v3990_v59 }
 0x192   : > { %3349 = vmatpush1.bf16.msra.mxu1 %v3348_v31  ;;  %2560 = vmatprep.mubr.f32.mxu1 %v3406_v0 }
 0x193   : > { %3351 = vmatprep.subr.bf16.mxu1 %v3350_v50  ;;  %3238 = vmatmul.mubr.msk.f32.gmra.mrb[92].mxu0 %vm2239_vm1, %v4034_v60 }
 0x194   : > { %2697 = vmatprep.mubr.f32.mxu0 %v3406_v0 }
 0x195   : > { %3227 = vmatmul.mubr.msk.f32.gmra.mrb[70].mxu1 %vm2239_vm1, %v4001_v8 }
 0x196   : > { %3353 = vmatpush1.bf16.msra.mxu1 %v3352_v33  ;;  %2566 = vmatprep.mubr.f32.mxu1 %v3406_v0 }
 0x197   : > { %3239 = vmatmul.mubr.msk.f32.gmra.mrb[94].mxu0 %vm2239_vm1, %v4047_v24 }
 0x198   : > { %2703 = vmatprep.mubr.f32.mxu0 %v3406_v0 }
 0x199   : > { %3228 = vmatmul.mubr.msk.f32.gmra.mrb[72].mxu1 %vm2239_vm1, %v4011_v36 }
 0x19a   : > { %2572 = vmatprep.mubr.f32.mxu1 %v3406_v0 }
 0x19b   : > { %3240 = vmatmul.mubr.msk.f32.gmra.mrb[96].mxu0 %vm2239_vm1, %v4060_v29 }
 0x19c   : > { %2709 = vmatprep.mubr.f32.mxu0 %v3406_v0 }
 0x19d   : > { %3229 = vmatmul.mubr.msk.f32.gmra.mrb[74].mxu1 %vm2239_vm1, %v4021_v23 }
 0x19e   : > { %2578 = vmatprep.mubr.f32.mxu1 %v3406_v0 }
 0x19f   : > { %3241 = vmatmul.mubr.msk.f32.gmra.mrb[98].mxu0 %vm2239_vm1, %v4073_v25 }
 0x1a1   : > { %3230 = vmatmul.mubr.msk.f32.gmra.mrb[76].mxu1 %vm2239_vm1, %v4034_v60 }
 0x1a2   : > { %2584 = vmatprep.mubr.f32.mxu1 %v3406_v0 }
 0x1a5   : > { %3231 = vmatmul.mubr.msk.f32.gmra.mrb[78].mxu1 %vm2239_vm1, %v4047_v24 }
 0x1a6   : > { %2590 = vmatprep.mubr.f32.mxu1 %v3406_v0 }
 0x1a9   : > { %3232 = vmatmul.mubr.msk.f32.gmra.mrb[80].mxu1 %vm2239_vm1, %v4060_v29 }
 0x1aa   : > { %2596 = vmatprep.mubr.f32.mxu1 %v3406_v0 }
 0x1ad   : > { %3233 = vmatmul.mubr.msk.f32.gmra.mrb[82].mxu1 %vm2239_vm1, %v4073_v25 }
 0x1ae   : > { %2780 = vmatprep.mubr.f32.mxu1 %v3406_v0 }
 0x1b1   : > { %3242 = vmatmul.mubr.msk.f32.vlgmr.msra.gmra.mrb[84].mxu1 %vm2239_vm1, %v3990_v59 }
 0x1b2   : > { %2786 = vmatprep.mubr.f32.mxu1 %v3406_v0 }
 0x1b5   : > { %3243 = vmatmul.mubr.msk.f32.gmra.mrb[86].mxu1 %vm2239_vm1, %v4001_v8 }
 0x1b6   : > { %2792 = vmatprep.mubr.f32.mxu1 %v3406_v0 }
 0x1b9   : > { %3244 = vmatmul.mubr.msk.f32.gmra.mrb[88].mxu1 %vm2239_vm1, %v4011_v36 }
 0x1ba   : > { %2798 = vmatprep.mubr.f32.mxu1 %v3406_v0 }
 0x1bd   : > { %3245 = vmatmul.mubr.msk.f32.gmra.mrb[90].mxu1 %vm2239_vm1, %v4021_v23 }
 0x1be   : > { %2804 = vmatprep.mubr.f32.mxu1 %v3406_v0 }
 0x1c1   : > { %3246 = vmatmul.mubr.msk.f32.gmra.mrb[92].mxu1 %vm2239_vm1, %v4034_v60 }
 0x1c2   : > { %2810 = vmatprep.mubr.f32.mxu1 %v3406_v0 }
 0x1c5   : > { %3247 = vmatmul.mubr.msk.f32.gmra.mrb[94].mxu1 %vm2239_vm1, %v4047_v24 }
 0x1c6   : > { %2816 = vmatprep.mubr.f32.mxu1 %v3406_v0 }
 0x1c9   : > { %3248 = vmatmul.mubr.msk.f32.gmra.mrb[96].mxu1 %vm2239_vm1, %v4060_v29 }
 0x1ca   : > { %2822 = vmatprep.mubr.f32.mxu1 %v3406_v0 }
 0x1cd   : > { %3249 = vmatmul.mubr.msk.f32.gmra.mrb[98].mxu1 %vm2239_vm1, %v4073_v25 }
 0x236   : > { %v2443_v28 = vpop.f32.mrb[68].mxu0 }
 0x237   : > { %2831 = vst [vmem:[%s4167_s11 + $0x10] sm:$0xff] %v2443_v28  ;;  %v2445_v5 = vpop.f32.mrb[69].mxu0 }
 0x238   : > { %2832 = vst [vmem:[%s4167_s11 + $0x18] sm:$0xff] %v2445_v5 }
 0x23a   : > { %v2449_v0 = vpop.f32.mrb[70].mxu0 }
 0x23b   : > { %2841 = vst [vmem:[%s4167_s11 + $0x60] sm:$0xff] %v2449_v0  ;;  %v2451_v59 = vpop.f32.mrb[71].mxu0 }
 0x23c   : > { %2842 = vst [vmem:[%s4167_s11 + $0x68] sm:$0xff] %v2451_v59 }
 0x23e   : > { %v2455_v8 = vpop.f32.mrb[72].mxu0 }
 0x23f   : > { %2851 = vst [vmem:[%s4167_s11 + $0xb0] sm:$0xff] %v2455_v8  ;;  %v2457_v3 = vpop.f32.mrb[73].mxu0 }
 0x240   : > { %2852 = vst [vmem:[%s4167_s11 + $0xb8] sm:$0xff] %v2457_v3 }
 0x242   : > { %v2461_v49 = vpop.f32.mrb[74].mxu0 }
 0x243   : > { %2861 = vst [vmem:[%s4167_s11 + $0x100] sm:$0xff] %v2461_v49  ;;  %v2463_v51 = vpop.f32.mrb[75].mxu0 }
 0x244   : > { %v2330_v16 = vpop.f32.mrb[52].mxu1  ;;  %2862 = vst [vmem:[%s4167_s11 + $0x108] sm:$0xff] %v2463_v51 }
 0x245   : > { %2829 = vst [vmem:[%s4167_s11] sm:$0xff] %v2330_v16  ;;  %v2332_v47 = vpop.f32.mrb[53].mxu1 }
 0x246   : > { %2830 = vst [vmem:[%s4167_s11 + $0x8] sm:$0xff] %v2332_v47  ;;  %v2467_v12 = vpop.f32.mrb[76].mxu0 }
 0x247   : > { %2871 = vst [vmem:[%s4167_s11 + $0x150] sm:$0xff] %v2467_v12  ;;  %v2469_v46 = vpop.f32.mrb[77].mxu0 }
 0x248   : > { %v2336_v15 = vpop.f32.mrb[54].mxu1  ;;  %2872 = vst [vmem:[%s4167_s11 + $0x158] sm:$0xff] %v2469_v46 }
 0x249   : > { %2839 = vst [vmem:[%s4167_s11 + $0x50] sm:$0xff] %v2336_v15  ;;  %v2338_v63 = vpop.f32.mrb[55].mxu1 }
 0x24a   : > { %2840 = vst [vmem:[%s4167_s11 + $0x58] sm:$0xff] %v2338_v63  ;;  %v2473_v36 = vpop.f32.mrb[78].mxu0 }
 0x24b   : > { %2881 = vst [vmem:[%s4167_s11 + $0x1a0] sm:$0xff] %v2473_v36  ;;  %v2475_v61 = vpop.f32.mrb[79].mxu0 }
 0x24c   : > { %v2342_v22 = vpop.f32.mrb[56].mxu1  ;;  %2882 = vst [vmem:[%s4167_s11 + $0x1a8] sm:$0xff] %v2475_v61 }
 0x24d   : > { %2849 = vst [vmem:[%s4167_s11 + $0xa0] sm:$0xff] %v2342_v22  ;;  %v2344_v18 = vpop.f32.mrb[57].mxu1  ;;  %v2931_v22 = vld [vmem:[%s4167_s11] sm:$0xff] (%p3462_p4) }
 0x24e   : > { %2850 = vst [vmem:[%s4167_s11 + $0xa8] sm:$0xff] %v2344_v18  ;;  %v2479_v53 = vpop.f32.mrb[80].mxu0  ;;  %v2933_v18 = vld [vmem:[%s4167_s11 + $0x8] sm:$0xff] (%p3462_p4)  ;;  %2932 = vst [vmem:[%s4261_s13] sm:$0xff] (%p3462_p4), %v2931_v22 }
 0x24f   : > { %2891 = vst [vmem:[%s4167_s11 + $0x1f0] sm:$0xff] %v2479_v53  ;;  %v2481_v39 = vpop.f32.mrb[81].mxu0  ;;  %v2935_v53 = vld [vmem:[%s4167_s11 + $0x10] sm:$0xff] (%p3462_p4)  ;;  %2934 = vst [vmem:[%s4261_s13 + $0x8] sm:$0xff] (%p3462_p4), %v2933_v18 }
 0x250   : > { %v2348_v41 = vpop.f32.mrb[58].mxu1  ;;  %2892 = vst [vmem:[%s4167_s11 + $0x1f8] sm:$0xff] %v2481_v39  ;;  %v2937_v39 = vld [vmem:[%s4167_s11 + $0x18] sm:$0xff] (%p3462_p4)  ;;  %2936 = vst [vmem:[%s4261_s13 + $0x10] sm:$0xff] (%p3462_p4), %v2935_v53 }
 0x251   : > { %2859 = vst [vmem:[%s4167_s11 + $0xf0] sm:$0xff] %v2348_v41  ;;  %v2350_v54 = vpop.f32.mrb[59].mxu1  ;;  %2938 = vst [vmem:[%s4261_s13 + $0x18] sm:$0xff] (%p3462_p4), %v2937_v39 }
 0x252   : > { %2860 = vst [vmem:[%s4167_s11 + $0xf8] sm:$0xff] %v2350_v54  ;;  %v2485_v19 = vpop.f32.mrb[82].mxu0 }
 0x253   : > { %2901 = vst [vmem:[%s4167_s11 + $0x240] sm:$0xff] %v2485_v19  ;;  %v2487_v23 = vpop.f32.mrb[83].mxu0 }
 0x254   : > { %v2354_v52 = vpop.f32.mrb[60].mxu1  ;;  %2902 = vst [vmem:[%s4167_s11 + $0x248] sm:$0xff] %v2487_v23 }
 0x255   : > { %2869 = vst [vmem:[%s4167_s11 + $0x140] sm:$0xff] %v2354_v52  ;;  %v2356_v58 = vpop.f32.mrb[61].mxu1 }
 0x256   : > { %2870 = vst [vmem:[%s4167_s11 + $0x148] sm:$0xff] %v2356_v58  ;;  %v2669_v20 = vpop.f32.mrb[84].mxu0 }
 0x257   : > { %2835 = vst [vmem:[%s4167_s11 + $0x30] sm:$0xff] %v2669_v20  ;;  %v2671_v48 = vpop.f32.mrb[85].mxu0  ;;  %v2951_v20 = vld [vmem:[%s4167_s11 + $0x50] sm:$0xff] (%p3462_p4) }
 0x258   : > { %v2360_v17 = vpop.f32.mrb[62].mxu1  ;;  %2836 = vst [vmem:[%s4167_s11 + $0x38] sm:$0xff] %v2671_v48  ;;  %v2953_v48 = vld [vmem:[%s4167_s11 + $0x58] sm:$0xff] (%p3462_p4)  ;;  %2952 = vst [vmem:[%s4261_s13 + $0xa0] sm:$0xff] (%p3462_p4), %v2951_v20 }
 0x259   : > { %2879 = vst [vmem:[%s4167_s11 + $0x190] sm:$0xff] %v2360_v17  ;;  %v2362_v60 = vpop.f32.mrb[63].mxu1  ;;  %2954 = vst [vmem:[%s4261_s13 + $0xa8] sm:$0xff] (%p3462_p4), %v2953_v48  ;;  %v2955_v17 = vld [vmem:[%s4167_s11 + $0x60] sm:$0xff] (%p3462_p4) }
 0x25a   : > { %2880 = vst [vmem:[%s4167_s11 + $0x198] sm:$0xff] %v2362_v60  ;;  %v2675_v2 = vpop.f32.mrb[86].mxu0  ;;  %v2957_v60 = vld [vmem:[%s4167_s11 + $0x68] sm:$0xff] (%p3462_p4)  ;;  %2956 = vst [vmem:[%s4261_s13 + $0xb0] sm:$0xff] (%p3462_p4), %v2955_v17 }
 0x25b   : > { %2845 = vst [vmem:[%s4167_s11 + $0x80] sm:$0xff] %v2675_v2  ;;  %v2677_v55 = vpop.f32.mrb[87].mxu0  ;;  %2958 = vst [vmem:[%s4261_s13 + $0xb8] sm:$0xff] (%p3462_p4), %v2957_v60 }
 0x25c   : > { %v2366_v44 = vpop.f32.mrb[64].mxu1  ;;  %2846 = vst [vmem:[%s4167_s11 + $0x88] sm:$0xff] %v2677_v55 }
 0x25d   : > { %2889 = vst [vmem:[%s4167_s11 + $0x1e0] sm:$0xff] %v2366_v44  ;;  %v2368_v10 = vpop.f32.mrb[65].mxu1 }
 0x25e   : > { %2890 = vst [vmem:[%s4167_s11 + $0x1e8] sm:$0xff] %v2368_v10  ;;  %v2681_v30 = vpop.f32.mrb[88].mxu0  ;;  %v2943_v19 = vld [vmem:[%s4167_s11 + $0x30] sm:$0xff] (%p3462_p4) }
 0x25f   : > { %2855 = vst [vmem:[%s4167_s11 + $0xd0] sm:$0xff] %v2681_v30  ;;  %v2683_v24 = vpop.f32.mrb[89].mxu0  ;;  %v2945_v23 = vld [vmem:[%s4167_s11 + $0x38] sm:$0xff] (%p3462_p4)  ;;  %2944 = vst [vmem:[%s4261_s13 + $0x30] sm:$0xff] (%p3462_p4), %v2943_v19 }
 0x260   : > { %v2372_v34 = vpop.f32.mrb[66].mxu1  ;;  %2856 = vst [vmem:[%s4167_s11 + $0xd8] sm:$0xff] %v2683_v24  ;;  %2946 = vst [vmem:[%s4261_s13 + $0x38] sm:$0xff] (%p3462_p4), %v2945_v23 }
 0x261   : > { %2899 = vst [vmem:[%s4167_s11 + $0x230] sm:$0xff] %v2372_v34  ;;  %v2374_v1 = vpop.f32.mrb[67].mxu1  ;;  %v2971_v34 = vld [vmem:[%s4167_s11 + $0xa0] sm:$0xff] (%p3462_p4) }
 0x262   : > { %2900 = vst [vmem:[%s4167_s11 + $0x238] sm:$0xff] %v2374_v1  ;;  %v2687_v32 = vpop.f32.mrb[90].mxu0  ;;  %v2963_v44 = vld [vmem:[%s4167_s11 + $0x80] sm:$0xff] (%p3462_p4)  ;;  %2972 = vst [vmem:[%s4261_s13 + $0x140] sm:$0xff] (%p3462_p4), %v2971_v34  ;;  %v2973_v1 = vld [vmem:[%s4167_s11 + $0xa8] sm:$0xff] (%p3462_p4) }
 0x263   : > { %2865 = vst [vmem:[%s4167_s11 + $0x120] sm:$0xff] %v2687_v32  ;;  %v2689_v7 = vpop.f32.mrb[91].mxu0  ;;  %v2965_v10 = vld [vmem:[%s4167_s11 + $0x88] sm:$0xff] (%p3462_p4)  ;;  %2964 = vst [vmem:[%s4261_s13 + $0xd0] sm:$0xff] (%p3462_p4), %v2963_v44  ;;  %v2975_v32 = vld [vmem:[%s4167_s11 + $0xb0] sm:$0xff] (%p3462_p4) }
 0x264   : > { %v2556_v37 = vpop.f32.mrb[68].mxu1  ;;  %2866 = vst [vmem:[%s4167_s11 + $0x128] sm:$0xff] %v2689_v7  ;;  %2966 = vst [vmem:[%s4261_s13 + $0xd8] sm:$0xff] (%p3462_p4), %v2965_v10  ;;  %v2977_v7 = vld [vmem:[%s4167_s11 + $0xb8] sm:$0xff] (%p3462_p4) }
 0x265   : > { %2833 = vst [vmem:[%s4167_s11 + $0x20] sm:$0xff] %v2556_v37  ;;  %v2558_v29 = vpop.f32.mrb[69].mxu1  ;;  %2974 = vst [vmem:[%s4261_s13 + $0x148] sm:$0xff] (%p3462_p4), %v2973_v1 }
 0x266   : > { %2834 = vst [vmem:[%s4167_s11 + $0x28] sm:$0xff] %v2558_v29  ;;  %v2693_v11 = vpop.f32.mrb[92].mxu0  ;;  %2976 = vst [vmem:[%s4261_s13 + $0x150] sm:$0xff] (%p3462_p4), %v2975_v32 }
 0x267   : > { %2875 = vst [vmem:[%s4167_s11 + $0x170] sm:$0xff] %v2693_v11  ;;  %v2695_v38 = vpop.f32.mrb[93].mxu0  ;;  %2978 = vst [vmem:[%s4261_s13 + $0x158] sm:$0xff] (%p3462_p4), %v2977_v7  ;;  %v2983_v11 = vld [vmem:[%s4167_s11 + $0xd0] sm:$0xff] (%p3462_p4) }
 0x268   : > { %v2562_v14 = vpop.f32.mrb[70].mxu1  ;;  %2876 = vst [vmem:[%s4167_s11 + $0x178] sm:$0xff] %v2695_v38  ;;  %2984 = vst [vmem:[%s4261_s13 + $0x170] sm:$0xff] (%p3462_p4), %v2983_v11  ;;  %v2985_v38 = vld [vmem:[%s4167_s11 + $0xd8] sm:$0xff] (%p3462_p4)  ;;  %v3071_v19 = vld [vmem:[%s4167_s11 + $0x230] sm:$0xff] (%p3462_p4) }
 0x269   : > { %2843 = vst [vmem:[%s4167_s11 + $0x70] sm:$0xff] %v2562_v14  ;;  %v2564_v6 = vpop.f32.mrb[71].mxu1  ;;  %2986 = vst [vmem:[%s4261_s13 + $0x178] sm:$0xff] (%p3462_p4), %v2985_v38  ;;  %v3073_v23 = vld [vmem:[%s4167_s11 + $0x238] sm:$0xff] (%p3462_p4) }
 0x26a   : > { %2844 = vst [vmem:[%s4167_s11 + $0x78] sm:$0xff] %v2564_v6  ;;  %v2699_v35 = vpop.f32.mrb[94].mxu0  ;;  %3072 = vst [vmem:[%s4261_s13 + $0x460] sm:$0xff] (%p3462_p4), %v3071_v19 }
 0x26b   : > { %2885 = vst [vmem:[%s4167_s11 + $0x1c0] sm:$0xff] %v2699_v35  ;;  %v2701_v25 = vpop.f32.mrb[95].mxu0  ;;  %v2991_v35 = vld [vmem:[%s4167_s11 + $0xf0] sm:$0xff] (%p3462_p4)  ;;  %3074 = vst [vmem:[%s4261_s13 + $0x468] sm:$0xff] (%p3462_p4), %v3073_v23 }
 0x26c   : > { %v2568_v62 = vpop.f32.mrb[72].mxu1  ;;  %2886 = vst [vmem:[%s4167_s11 + $0x1c8] sm:$0xff] %v2701_v25  ;;  %v2939_v41 = vld [vmem:[%s4167_s11 + $0x20] sm:$0xff] (%p3462_p4)  ;;  %v2993_v25 = vld [vmem:[%s4167_s11 + $0xf8] sm:$0xff] (%p3462_p4)  ;;  %2992 = vst [vmem:[%s4261_s13 + $0x1e0] sm:$0xff] (%p3462_p4), %v2991_v35 }
 0x26d   : > { %2853 = vst [vmem:[%s4167_s11 + $0xc0] sm:$0xff] %v2568_v62  ;;  %v2570_v26 = vpop.f32.mrb[73].mxu1  ;;  %v2941_v54 = vld [vmem:[%s4167_s11 + $0x28] sm:$0xff] (%p3462_p4)  ;;  %2940 = vst [vmem:[%s4261_s13 + $0x20] sm:$0xff] (%p3462_p4), %v2939_v41  ;;  %v2995_v62 = vld [vmem:[%s4167_s11 + $0x100] sm:$0xff] (%p3462_p4) }
 0x26e   : > { %2854 = vst [vmem:[%s4167_s11 + $0xc8] sm:$0xff] %v2570_v26  ;;  %v2705_v21 = vpop.f32.mrb[96].mxu0  ;;  %2942 = vst [vmem:[%s4261_s13 + $0x28] sm:$0xff] (%p3462_p4), %v2941_v54  ;;  %v2997_v26 = vld [vmem:[%s4167_s11 + $0x108] sm:$0xff] (%p3462_p4) }
 0x26f   : > { %2895 = vst [vmem:[%s4167_s11 + $0x210] sm:$0xff] %v2705_v21  ;;  %v2707_v43 = vpop.f32.mrb[97].mxu0  ;;  %2994 = vst [vmem:[%s4261_s13 + $0x1e8] sm:$0xff] (%p3462_p4), %v2993_v25 }
 0x270   : > { %v2574_v31 = vpop.f32.mrb[74].mxu1  ;;  %2896 = vst [vmem:[%s4167_s11 + $0x218] sm:$0xff] %v2707_v43  ;;  %v2959_v2 = vld [vmem:[%s4167_s11 + $0x70] sm:$0xff] (%p3462_p4)  ;;  %2996 = vst [vmem:[%s4261_s13 + $0x1f0] sm:$0xff] (%p3462_p4), %v2995_v62 }
 0x271   : > { %2863 = vst [vmem:[%s4167_s11 + $0x110] sm:$0xff] %v2574_v31  ;;  %v2576_v13 = vpop.f32.mrb[75].mxu1  ;;  %2960 = vst [vmem:[%s4261_s13 + $0xc0] sm:$0xff] (%p3462_p4), %v2959_v2  ;;  %v2961_v55 = vld [vmem:[%s4167_s11 + $0x78] sm:$0xff] (%p3462_p4)  ;;  %v3003_v31 = vld [vmem:[%s4167_s11 + $0x120] sm:$0xff] (%p3462_p4) }
 0x272   : > { %2864 = vst [vmem:[%s4167_s11 + $0x118] sm:$0xff] %v2576_v13  ;;  %v2711_v27 = vpop.f32.mrb[98].mxu0  ;;  %2962 = vst [vmem:[%s4261_s13 + $0xc8] sm:$0xff] (%p3462_p4), %v2961_v55  ;;  %v3005_v13 = vld [vmem:[%s4167_s11 + $0x128] sm:$0xff] (%p3462_p4) }
 0x273   : > { %2905 = vst [vmem:[%s4167_s11 + $0x260] sm:$0xff] %v2711_v27  ;;  %v2713_v9 = vpop.f32.mrb[99].mxu0  ;;  %2998 = vst [vmem:[%s4261_s13 + $0x1f8] sm:$0xff] (%p3462_p4), %v2997_v26 }
 0x274   : > { %v2580_v45 = vpop.f32.mrb[76].mxu1  ;;  %2906 = vst [vmem:[%s4167_s11 + $0x268] sm:$0xff] %v2713_v9  ;;  %v2979_v37 = vld [vmem:[%s4167_s11 + $0xc0] sm:$0xff] (%p3462_p4)  ;;  %3004 = vst [vmem:[%s4261_s13 + $0x210] sm:$0xff] (%p3462_p4), %v3003_v31 }
 0x275   : > { %2873 = vst [vmem:[%s4167_s11 + $0x160] sm:$0xff] %v2580_v45  ;;  %v2582_v4 = vpop.f32.mrb[77].mxu1  ;;  %v2981_v29 = vld [vmem:[%s4167_s11 + $0xc8] sm:$0xff] (%p3462_p4)  ;;  %2980 = vst [vmem:[%s4261_s13 + $0x160] sm:$0xff] (%p3462_p4), %v2979_v37  ;;  %v3011_v45 = vld [vmem:[%s4167_s11 + $0x140] sm:$0xff] (%p3462_p4) }
 0x276   : > { %2874 = vst [vmem:[%s4167_s11 + $0x168] sm:$0xff] %v2582_v4  ;;  %2982 = vst [vmem:[%s4261_s13 + $0x168] sm:$0xff] (%p3462_p4), %v2981_v29  ;;  %v3013_v4 = vld [vmem:[%s4167_s11 + $0x148] sm:$0xff] (%p3462_p4)  ;;  %v3063_v53 = vld [vmem:[%s4167_s11 + $0x210] sm:$0xff] (%p3462_p4) }
 0x277   : > { %3006 = vst [vmem:[%s4261_s13 + $0x218] sm:$0xff] (%p3462_p4), %v3005_v13  ;;  %3012 = vst [vmem:[%s4261_s13 + $0x280] sm:$0xff] (%p3462_p4), %v3011_v45  ;;  %v3065_v39 = vld [vmem:[%s4167_s11 + $0x218] sm:$0xff] (%p3462_p4) }
 0x278   : > { %v2586_v57 = vpop.f32.mrb[78].mxu1  ;;  %v2999_v21 = vld [vmem:[%s4167_s11 + $0x110] sm:$0xff] (%p3462_p4)  ;;  %3014 = vst [vmem:[%s4261_s13 + $0x288] sm:$0xff] (%p3462_p4), %v3013_v4  ;;  %3064 = vst [vmem:[%s4261_s13 + $0x3f0] sm:$0xff] (%p3462_p4), %v3063_v53 }
 0x279   : > { %2883 = vst [vmem:[%s4167_s11 + $0x1b0] sm:$0xff] %v2586_v57  ;;  %v2588_v40 = vpop.f32.mrb[79].mxu1  ;;  %v3001_v43 = vld [vmem:[%s4167_s11 + $0x118] sm:$0xff] (%p3462_p4)  ;;  %3000 = vst [vmem:[%s4261_s13 + $0x200] sm:$0xff] (%p3462_p4), %v2999_v21  ;;  %v3015_v57 = vld [vmem:[%s4167_s11 + $0x150] sm:$0xff] (%p3462_p4) }
 0x27a   : > { %2884 = vst [vmem:[%s4167_s11 + $0x1b8] sm:$0xff] %v2588_v40  ;;  %3002 = vst [vmem:[%s4261_s13 + $0x208] sm:$0xff] (%p3462_p4), %v3001_v43  ;;  %v3017_v40 = vld [vmem:[%s4167_s11 + $0x158] sm:$0xff] (%p3462_p4)  ;;  %v3083_v17 = vld [vmem:[%s4167_s11 + $0x260] sm:$0xff] (%p3462_p4) }
 0x27b   : > { %3016 = vst [vmem:[%s4261_s13 + $0x290] sm:$0xff] (%p3462_p4), %v3015_v57  ;;  %3018 = vst [vmem:[%s4261_s13 + $0x298] sm:$0xff] (%p3462_p4), %v3017_v40  ;;  %v3085_v60 = vld [vmem:[%s4167_s11 + $0x268] sm:$0xff] (%p3462_p4) }
 0x27c   : > { %v2592_v42 = vpop.f32.mrb[80].mxu1  ;;  %3066 = vst [vmem:[%s4261_s13 + $0x3f8] sm:$0xff] (%p3462_p4), %v3065_v39  ;;  %3084 = vst [vmem:[%s4261_s13 + $0x490] sm:$0xff] (%p3462_p4), %v3083_v17 }
 0x27d   : > { %2893 = vst [vmem:[%s4167_s11 + $0x200] sm:$0xff] %v2592_v42  ;;  %v2594_v56 = vpop.f32.mrb[81].mxu1  ;;  %v3019_v42 = vld [vmem:[%s4167_s11 + $0x160] sm:$0xff] (%p3462_p4)  ;;  %3086 = vst [vmem:[%s4261_s13 + $0x498] sm:$0xff] (%p3462_p4), %v3085_v60 }
 0x27e   : > { %2894 = vst [vmem:[%s4167_s11 + $0x208] sm:$0xff] %v2594_v56  ;;  %3020 = vst [vmem:[%s4261_s13 + $0x2a0] sm:$0xff] (%p3462_p4), %v3019_v42  ;;  %v3021_v56 = vld [vmem:[%s4167_s11 + $0x168] sm:$0xff] (%p3462_p4) }
 0x27f   : > { %3022 = vst [vmem:[%s4261_s13 + $0x2a8] sm:$0xff] (%p3462_p4), %v3021_v56 }
 0x280   : > { %v2598_v33 = vpop.f32.mrb[82].mxu1 }
 0x281   : > { %2903 = vst [vmem:[%s4167_s11 + $0x250] sm:$0xff] %v2598_v33  ;;  %v2600_v50 = vpop.f32.mrb[83].mxu1  ;;  %v3023_v33 = vld [vmem:[%s4167_s11 + $0x170] sm:$0xff] (%p3462_p4) }
 0x282   : > { %2904 = vst [vmem:[%s4167_s11 + $0x258] sm:$0xff] %v2600_v50  ;;  %v3025_v50 = vld [vmem:[%s4167_s11 + $0x178] sm:$0xff] (%p3462_p4)  ;;  %3024 = vst [vmem:[%s4261_s13 + $0x2b0] sm:$0xff] (%p3462_p4), %v3023_v33 }
 0x283   : > { %3026 = vst [vmem:[%s4261_s13 + $0x2b8] sm:$0xff] (%p3462_p4), %v3025_v50 }
 0x284   : > { %v2782_v28 = vpop.f32.mrb[84].mxu1  ;;  %v3059_v22 = vld [vmem:[%s4167_s11 + $0x200] sm:$0xff] (%p3462_p4) }
 0x285   : > { %2837 = vst [vmem:[%s4167_s11 + $0x40] sm:$0xff] %v2782_v28  ;;  %v2784_v5 = vpop.f32.mrb[85].mxu1  ;;  %v3061_v18 = vld [vmem:[%s4167_s11 + $0x208] sm:$0xff] (%p3462_p4)  ;;  %3060 = vst [vmem:[%s4261_s13 + $0x3e0] sm:$0xff] (%p3462_p4), %v3059_v22 }
 0x286   : > { %2838 = vst [vmem:[%s4167_s11 + $0x48] sm:$0xff] %v2784_v5  ;;  %3062 = vst [vmem:[%s4261_s13 + $0x3e8] sm:$0xff] (%p3462_p4), %v3061_v18 }
 0x288   : > { %v2788_v0 = vpop.f32.mrb[86].mxu1  ;;  %v3079_v20 = vld [vmem:[%s4167_s11 + $0x250] sm:$0xff] (%p3462_p4) }
 0x289   : > { %2847 = vst [vmem:[%s4167_s11 + $0x90] sm:$0xff] %v2788_v0  ;;  %v2790_v59 = vpop.f32.mrb[87].mxu1  ;;  %v3031_v0 = vld [vmem:[%s4167_s11 + $0x190] sm:$0xff] (%p3462_p4)  ;;  %3080 = vst [vmem:[%s4261_s13 + $0x480] sm:$0xff] (%p3462_p4), %v3079_v20  ;;  %v3081_v48 = vld [vmem:[%s4167_s11 + $0x258] sm:$0xff] (%p3462_p4) }
 0x28a   : > { %2848 = vst [vmem:[%s4167_s11 + $0x98] sm:$0xff] %v2790_v59  ;;  %3032 = vst [vmem:[%s4261_s13 + $0x320] sm:$0xff] (%p3462_p4), %v3031_v0  ;;  %v3033_v59 = vld [vmem:[%s4167_s11 + $0x198] sm:$0xff] (%p3462_p4) }
 0x28b   : > { %3034 = vst [vmem:[%s4261_s13 + $0x328] sm:$0xff] (%p3462_p4), %v3033_v59  ;;  %3082 = vst [vmem:[%s4261_s13 + $0x488] sm:$0xff] (%p3462_p4), %v3081_v48 }
 0x28c   : > { %v2794_v8 = vpop.f32.mrb[88].mxu1  ;;  %v2947_v52 = vld [vmem:[%s4167_s11 + $0x40] sm:$0xff] (%p3462_p4) }
 0x28d   : > { %2857 = vst [vmem:[%s4167_s11 + $0xe0] sm:$0xff] %v2794_v8  ;;  %v2796_v3 = vpop.f32.mrb[89].mxu1  ;;  %2948 = vst [vmem:[%s4261_s13 + $0x40] sm:$0xff] (%p3462_p4), %v2947_v52  ;;  %v2949_v58 = vld [vmem:[%s4167_s11 + $0x48] sm:$0xff] (%p3462_p4)  ;;  %v3035_v8 = vld [vmem:[%s4167_s11 + $0x1a0] sm:$0xff] (%p3462_p4) }
 0x28e   : > { %2858 = vst [vmem:[%s4167_s11 + $0xe8] sm:$0xff] %v2796_v3  ;;  %2950 = vst [vmem:[%s4261_s13 + $0x48] sm:$0xff] (%p3462_p4), %v2949_v58  ;;  %v3037_v3 = vld [vmem:[%s4167_s11 + $0x1a8] sm:$0xff] (%p3462_p4)  ;;  %v3075_v52 = vld [vmem:[%s4167_s11 + $0x240] sm:$0xff] (%p3462_p4) }
 0x28f   : > { %3036 = vst [vmem:[%s4261_s13 + $0x330] sm:$0xff] (%p3462_p4), %v3035_v8  ;;  %3038 = vst [vmem:[%s4261_s13 + $0x338] sm:$0xff] (%p3462_p4), %v3037_v3  ;;  %v3077_v58 = vld [vmem:[%s4167_s11 + $0x248] sm:$0xff] (%p3462_p4) }
 0x290   : > { %v2800_v49 = vpop.f32.mrb[90].mxu1  ;;  %v2967_v30 = vld [vmem:[%s4167_s11 + $0x90] sm:$0xff] (%p3462_p4)  ;;  %3076 = vst [vmem:[%s4261_s13 + $0x470] sm:$0xff] (%p3462_p4), %v3075_v52  ;;  %3078 = vst [vmem:[%s4261_s13 + $0x478] sm:$0xff] (%p3462_p4), %v3077_v58 }
 0x291   : > { %2867 = vst [vmem:[%s4167_s11 + $0x130] sm:$0xff] %v2800_v49  ;;  %v2802_v51 = vpop.f32.mrb[91].mxu1  ;;  %v2969_v24 = vld [vmem:[%s4167_s11 + $0x98] sm:$0xff] (%p3462_p4)  ;;  %2968 = vst [vmem:[%s4261_s13 + $0xe0] sm:$0xff] (%p3462_p4), %v2967_v30  ;;  %v3039_v49 = vld [vmem:[%s4167_s11 + $0x1b0] sm:$0xff] (%p3462_p4) }
 0x292   : > { %2868 = vst [vmem:[%s4167_s11 + $0x138] sm:$0xff] %v2802_v51  ;;  %2970 = vst [vmem:[%s4261_s13 + $0xe8] sm:$0xff] (%p3462_p4), %v2969_v24  ;;  %v3041_v51 = vld [vmem:[%s4167_s11 + $0x1b8] sm:$0xff] (%p3462_p4) }
 0x293   : > { %3040 = vst [vmem:[%s4261_s13 + $0x340] sm:$0xff] (%p3462_p4), %v3039_v49  ;;  %3042 = vst [vmem:[%s4261_s13 + $0x348] sm:$0xff] (%p3462_p4), %v3041_v51 }
 0x294   : > { %v2806_v16 = vpop.f32.mrb[92].mxu1  ;;  %v2987_v14 = vld [vmem:[%s4167_s11 + $0xe0] sm:$0xff] (%p3462_p4) }
 0x295   : > { %2877 = vst [vmem:[%s4167_s11 + $0x180] sm:$0xff] %v2806_v16  ;;  %v2808_v47 = vpop.f32.mrb[93].mxu1  ;;  %v2989_v6 = vld [vmem:[%s4167_s11 + $0xe8] sm:$0xff] (%p3462_p4)  ;;  %2988 = vst [vmem:[%s4261_s13 + $0x180] sm:$0xff] (%p3462_p4), %v2987_v14  ;;  %v3043_v16 = vld [vmem:[%s4167_s11 + $0x1c0] sm:$0xff] (%p3462_p4) }
 0x296   : > { %2878 = vst [vmem:[%s4167_s11 + $0x188] sm:$0xff] %v2808_v47  ;;  %2990 = vst [vmem:[%s4261_s13 + $0x188] sm:$0xff] (%p3462_p4), %v2989_v6  ;;  %v3045_v47 = vld [vmem:[%s4167_s11 + $0x1c8] sm:$0xff] (%p3462_p4) }
 0x297   : > { %3044 = vst [vmem:[%s4261_s13 + $0x350] sm:$0xff] (%p3462_p4), %v3043_v16  ;;  %3046 = vst [vmem:[%s4261_s13 + $0x358] sm:$0xff] (%p3462_p4), %v3045_v47 }
 0x298   : > { %v2812_v12 = vpop.f32.mrb[94].mxu1  ;;  %v3007_v27 = vld [vmem:[%s4167_s11 + $0x130] sm:$0xff] (%p3462_p4) }
 0x299   : > { %2887 = vst [vmem:[%s4167_s11 + $0x1d0] sm:$0xff] %v2812_v12  ;;  %v2814_v46 = vpop.f32.mrb[95].mxu1  ;;  %3008 = vst [vmem:[%s4261_s13 + $0x220] sm:$0xff] (%p3462_p4), %v3007_v27  ;;  %v3009_v9 = vld [vmem:[%s4167_s11 + $0x138] sm:$0xff] (%p3462_p4) }
 0x29a   : > { %2888 = vst [vmem:[%s4167_s11 + $0x1d8] sm:$0xff] %v2814_v46  ;;  %3010 = vst [vmem:[%s4261_s13 + $0x228] sm:$0xff] (%p3462_p4), %v3009_v9 }
 0x29c   : > { %v2818_v15 = vpop.f32.mrb[96].mxu1  ;;  %2915 = sbr.rel (!%p3462_p4) target bundleno = 683 (0x2ab), region = 44  ;;  %v3027_v28 = vld [vmem:[%s4167_s11 + $0x180] sm:$0xff] (%p3462_p4) }
 0x29d   : > { %2897 = vst [vmem:[%s4167_s11 + $0x220] sm:$0xff] %v2818_v15  ;;  %v2820_v63 = vpop.f32.mrb[97].mxu1  ;;  %v3029_v5 = vld [vmem:[%s4167_s11 + $0x188] sm:$0xff] (%p3462_p4)  ;;  %3028 = vst [vmem:[%s4261_s13 + $0x2c0] sm:$0xff] (%p3462_p4), %v3027_v28  ;;  %v3051_v15 = vld [vmem:[%s4167_s11 + $0x1e0] sm:$0xff] (%p3462_p4) }
 0x29e   : > { %2898 = vst [vmem:[%s4167_s11 + $0x228] sm:$0xff] %v2820_v63  ;;  %3030 = vst [vmem:[%s4261_s13 + $0x2c8] sm:$0xff] (%p3462_p4), %v3029_v5  ;;  %v3053_v63 = vld [vmem:[%s4167_s11 + $0x1e8] sm:$0xff] (%p3462_p4) }
 0x29f   : > { %3052 = vst [vmem:[%s4261_s13 + $0x3c0] sm:$0xff] (%p3462_p4), %v3051_v15  ;;  %3054 = vst [vmem:[%s4261_s13 + $0x3c8] sm:$0xff] (%p3462_p4), %v3053_v63 }
 0x2a0   : > { %v2824_v36 = vpop.f32.mrb[98].mxu1  ;;  %v3047_v12 = vld [vmem:[%s4167_s11 + $0x1d0] sm:$0xff] (%p3462_p4) }
 0x2a1   : > { %2907 = vst [vmem:[%s4167_s11 + $0x270] sm:$0xff] %v2824_v36  ;;  %v2826_v61 = vpop.f32.mrb[99].mxu1  ;;  %v3049_v46 = vld [vmem:[%s4167_s11 + $0x1d8] sm:$0xff] (%p3462_p4)  ;;  %3048 = vst [vmem:[%s4261_s13 + $0x360] sm:$0xff] (%p3462_p4), %v3047_v12  ;;  %v3055_v36 = vld [vmem:[%s4167_s11 + $0x1f0] sm:$0xff] (%p3462_p4) }
 0x2a2   : > { %2908 = vst [vmem:[%s4167_s11 + $0x278] sm:$0xff] %v2826_v61  ;;  %3050 = vst [vmem:[%s4261_s13 + $0x368] sm:$0xff] (%p3462_p4), %v3049_v46  ;;  %v3057_v61 = vld [vmem:[%s4167_s11 + $0x1f8] sm:$0xff] (%p3462_p4) }
 0x2a3   : > { %3056 = vst [vmem:[%s4261_s13 + $0x3d0] sm:$0xff] %v3055_v36  ;;  %3058 = vst [vmem:[%s4261_s13 + $0x3d8] sm:$0xff] %v3057_v61 }
 0x2a4   : > { %v3067_v41 = vld [vmem:[%s4167_s11 + $0x220] sm:$0xff] }
 0x2a5   : > { %3068 = vst [vmem:[%s4261_s13 + $0x400] sm:$0xff] %v3067_v41  ;;  %v3069_v54 = vld [vmem:[%s4167_s11 + $0x228] sm:$0xff] }
 0x2a6   : > { %3070 = vst [vmem:[%s4261_s13 + $0x408] sm:$0xff] %v3069_v54 }
 0x2a8   : > { %v3087_v2 = vld [vmem:[%s4167_s11 + $0x270] sm:$0xff] }
 0x2a9   : > { %v3089_v55 = vld [vmem:[%s4167_s11 + $0x278] sm:$0xff]  ;;  %3088 = vst [vmem:[%s4261_s13 + $0x4a0] sm:$0xff] %v3087_v2 }
 0x2aa   : > { %3090 = vst [vmem:[%s4261_s13 + $0x4a8] sm:$0xff] %v3089_v55 }
 0x2ab PF: > { %p12_p8 = scmp.ge.s32.totalorder %s3452_s22, 4   ;;  %s4434_s18 = smov %s3400_s19 }
 0x2ac   : > { %s4435_s19 = smov %s3460_s25  ;;  %s4436_s20 = smov %s3452_s22 }
 0x2ad   :  { %14 = sbr.rel (!%p12_p8) target bundleno = 2 (0x2), region = 93 }

</bundles_post_ra>
